<compile_context>
chip_gen: v6e
topology: v6e:2x2x1
jax: 0.10.0
libtpu: 0.0.40
codegen_flags: <defaults>
</compile_context>

<pallas_src>
import functools

import jax
import jax.numpy as jnp
from jax.experimental import pallas as pl
from jax.experimental.pallas import tpu as pltpu


# ------------------------------------------------------------------
# helpers
# ------------------------------------------------------------------

def _pick_tile(n, target):
    """Largest multiple-of-128 tile <= target that evenly divides n, else full n."""
    if n <= target or n % 128 != 0:
        return n
    start = target - (target % 128)
    for t in range(start, 0, -128):
        if n % t == 0:
            return t
    return n


# ------------------------------------------------------------------
# matmul kernel:  (Cout, K) @ (K, N*H*W) -> (Cout, N*H*W)
#   - lane-dense output (last dim is the big axis) => unmasked vst
#   - bf16 operands, f32 accumulation on the MXU
#   - grid only over the wide N axis; Cout and K (= 4*Cin <= 1024) stay whole,
#     so double-buffered tiles are ~2 MiB: fits every generation's scoped VMEM
#   - optional fused tanh epilogue (last layer)
# ------------------------------------------------------------------

def _matmul_kernel(a_ref, b_ref, o_ref, *, activation):
    acc = jnp.dot(a_ref[...], b_ref[...], preferred_element_type=jnp.float32)
    if activation == "tanh":
        acc = jnp.tanh(acc)
    o_ref[...] = acc


def pallas_matmul(a, b, activation=None):
    m, k = a.shape
    k2, n = b.shape
    assert k == k2
    tn = _pick_tile(n, 512)
    a_bf = a.astype(jnp.bfloat16)
    b_bf = b.astype(jnp.bfloat16)
    kern = functools.partial(_matmul_kernel, activation=activation)
    return pl.pallas_call(
        kern,
        out_shape=jax.ShapeDtypeStruct((m, n), jnp.float32),
        grid=(n // tn,),
        in_specs=[pl.BlockSpec((m, k), lambda j: (0, 0)),     # weights resident
                  pl.BlockSpec((k, tn), lambda j: (0, j))],
        out_specs=pl.BlockSpec((m, tn), lambda j: (0, j)),
        compiler_params=pltpu.CompilerParams(
            dimension_semantics=("parallel",)),
        cost_estimate=pl.CostEstimate(
            flops=2 * m * k * n,
            transcendentals=(m * n if activation == "tanh" else 0),
            bytes_accessed=2 * m * k + 2 * k * n + 4 * m * n),
    )(a_bf, b_bf)


# ------------------------------------------------------------------
# BatchNorm2d (training-mode batch stats) + ReLU on a (C, N*H*W) slab.
#   pass 1: per-channel sum / sum-of-squares in one read, accumulated across
#           M tiles via a resident (C,1) output ("arbitrary" axis)
#   pass 2: normalize + ReLU, lane-dense, fully parallel over M tiles
# ------------------------------------------------------------------

def _bn_stats_kernel(x_ref, sum_ref, ssq_ref):
    @pl.when(pl.program_id(0) == 0)
    def _():
        sum_ref[...] = jnp.zeros_like(sum_ref)
        ssq_ref[...] = jnp.zeros_like(ssq_ref)
    x = x_ref[...]
    sum_ref[...] += jnp.sum(x, axis=1, keepdims=True)
    ssq_ref[...] += jnp.sum(x * x, axis=1, keepdims=True)


def _bn_apply_kernel(x_ref, sum_ref, ssq_ref, g_ref, b_ref, o_ref, *, count, eps):
    inv_n = 1.0 / count
    mean = sum_ref[...] * inv_n
    var = jnp.maximum(ssq_ref[...] * inv_n - mean * mean, 0.0)   # biased (train-mode)
    scale = g_ref[...] * jax.lax.rsqrt(var + eps)
    shift = b_ref[...] - mean * scale
    o_ref[...] = jnp.maximum(x_ref[...] * scale + shift, 0.0)    # fused ReLU(True)


def bn_relu(x_cnhw, gamma, beta, eps=1e-5):
    # TODO(synk): PyTorch eval-mode BatchNorm2d would use running_mean/var;
    # training-mode batch statistics are implemented here (matches module in train()).
    c = x_cnhw.shape[0]
    m = x_cnhw.size // c
    x_cm = x_cnhw.reshape(c, m)
    tm = _pick_tile(m, 2048)
    g = gamma.reshape(c, 1).astype(jnp.float32)
    b = beta.reshape(c, 1).astype(jnp.float32)

    s, ssq = pl.pallas_call(
        _bn_stats_kernel,
        out_shape=(jax.ShapeDtypeStruct((c, 1), jnp.float32),
                   jax.ShapeDtypeStruct((c, 1), jnp.float32)),
        grid=(m // tm,),
        in_specs=[pl.BlockSpec((c, tm), lambda j: (0, j))],
        out_specs=(pl.BlockSpec((c, 1), lambda j: (0, 0)),
                   pl.BlockSpec((c, 1), lambda j: (0, 0))),
        compiler_params=pltpu.CompilerParams(
            dimension_semantics=("arbitrary",)),
    )(x_cm)

    kern = functools.partial(_bn_apply_kernel, count=float(m), eps=eps)
    y = pl.pallas_call(
        kern,
        out_shape=jax.ShapeDtypeStruct((c, m), jnp.float32),
        grid=(m // tm,),
        in_specs=[pl.BlockSpec((c, tm), lambda j: (0, j)),
                  pl.BlockSpec((c, 1), lambda j: (0, 0)),
                  pl.BlockSpec((c, 1), lambda j: (0, 0)),
                  pl.BlockSpec((c, 1), lambda j: (0, 0)),
                  pl.BlockSpec((c, 1), lambda j: (0, 0))],
        out_specs=pl.BlockSpec((c, tm), lambda j: (0, j)),
        compiler_params=pltpu.CompilerParams(
            dimension_semantics=("parallel",)),
    )(x_cm, s, ssq, g, b)
    return y.reshape(x_cnhw.shape)


# ------------------------------------------------------------------
# ConvTranspose2d layers
# ------------------------------------------------------------------

# Phase tap tables for ConvTranspose2d(k=4, stride=2, padding=1):
# output row i = 2u + pi reads input rows h' through kernel rows a:
#   pi=0: (a=1, h'=u), (a=3, h'=u-1)   ;   pi=1: (a=0, h'=u+1), (a=2, h'=u)
# The second entry is the row offset into the 1-zero-padded input (h' = u+off-1);
# out-of-range rows fall on the zero padding. Columns are identical.
_PHASE_TAPS = {0: ((1, 1), (3, 0)), 1: ((0, 2), (2, 1))}


def conv_transpose_s2(x_cnhw, w, activation=None):
    """ConvTranspose2d(Cin, Cout, 4, stride=2, padding=1, bias=False) on a
    (Cin, N, H, W) slab -> (Cout, N, 2H, 2W) slab via 4 phase matmuls."""
    cin, n, h, wdt = x_cnhw.shape
    cin2, cout, kh, kw = w.shape
    assert cin == cin2 and kh == 4 and kw == 4
    xp = jnp.pad(x_cnhw, ((0, 0), (0, 0), (1, 1), (1, 1)))
    ncols = n * h * wdt
    phase_out = []
    for pi in (0, 1):
        for pj in (0, 1):
            taps = [(a, b, ro, co)
                    for (a, ro) in _PHASE_TAPS[pi]
                    for (b, co) in _PHASE_TAPS[pj]]
            # B: (4*Cin, N*H*W), K ordered (tap, cin) -- four shifted views, no dilation.
            bmat = jnp.stack(
                [xp[:, :, ro:ro + h, co:co + wdt] for (_, _, ro, co) in taps],
                axis=0).reshape(4 * cin, ncols)
            # A: (Cout, 4*Cin) with the matching (tap, cin) ordering.
            amat = jnp.transpose(
                jnp.stack([w[:, :, a, b] for (a, b, _, _) in taps], axis=0),
                (2, 0, 1)).reshape(cout, 4 * cin)
            y = pallas_matmul(amat, bmat, activation=activation)   # (Cout, N*H*W)
            phase_out.append(y.reshape(cout, n, h, wdt))
    # interleave the 4 phases: out[c, n, 2u+pi, 2v+pj] = phase[pi,pj][c, n, u, v]
    ph = jnp.stack(phase_out, axis=0).reshape(2, 2, cout, n, h, wdt)
    return jnp.transpose(ph, (2, 3, 4, 0, 5, 1)).reshape(cout, n, 2 * h, 2 * wdt)


def conv_transpose_first(z, w):
    """ConvTranspose2d(nz, Cout, 4, stride=1, padding=0) on (N, nz, 1, 1) ->
    (Cout, N, 4, 4) slab.  M=N, K=nz matmul is <<1 MXU pass; per perf review it
    is kept in XLA instead of paying a pallas_call round trip."""
    n = z.shape[0]
    return jnp.einsum('nc,cohw->onhw', z.reshape(n, -1), w)


# ------------------------------------------------------------------
# Generator forward (nn.Sequential of the DCGAN generator)
# ------------------------------------------------------------------

def generator_forward(z, params):
    x = conv_transpose_first(z, params['w1'])                    # (4*ngf, N, 4, 4)
    x = bn_relu(x, params['g1'], params['b1'])
    x = conv_transpose_s2(x, params['w2'])                       # (2*ngf, N, 8, 8)
    x = bn_relu(x, params['g2'], params['b2'])
    x = conv_transpose_s2(x, params['w3'])                       # (ngf,   N, 16, 16)
    x = bn_relu(x, params['g3'], params['b3'])
    x = conv_transpose_s2(x, params['w4'], activation="tanh")    # (nc,    N, 32, 32), Tanh fused
    return jnp.transpose(x, (1, 0, 2, 3))                        # back to NCHW


if __name__ == "__main__":
    # small shapes consistent with the module: nz latent, ngf feature maps, nc=3
    nz, ngf, nc, batch = 16, 8, 3, 2
    key = jax.random.PRNGKey(0)
    ks = jax.random.split(key, 8)
    # ConvTranspose2d weight layout: (in_channels, out_channels, kH, kW)
    params = {
        'w1': 0.02 * jax.random.normal(ks[0], (nz, ngf * 4, 4, 4), jnp.float32),
        'g1': jnp.ones((ngf * 4,), jnp.float32),
        'b1': jnp.zeros((ngf * 4,), jnp.float32),
        'w2': 0.02 * jax.random.normal(ks[1], (ngf * 4, ngf * 2, 4, 4), jnp.float32),
        'g2': jnp.ones((ngf * 2,), jnp.float32),
        'b2': jnp.zeros((ngf * 2,), jnp.float32),
        'w3': 0.02 * jax.random.normal(ks[2], (ngf * 2, ngf, 4, 4), jnp.float32),
        'g3': jnp.ones((ngf,), jnp.float32),
        'b3': jnp.zeros((ngf,), jnp.float32),
        'w4': 0.02 * jax.random.normal(ks[3], (ngf, nc, 4, 4), jnp.float32),
    }
    z = jax.random.normal(ks[4], (batch, nz, 1, 1), jnp.float32)

    out = jax.jit(generator_forward)(z, params)
    jax.block_until_ready(out)
    assert out.shape == (batch, nc, 32, 32)
    assert bool(jnp.all(jnp.isfinite(out)))
    print("KERNEL_OK")
</pallas_src>

<mosaic_0001>
module attributes {stable_mosaic.version = 11 : i64} {
  func.func @_bn_stats_kernel(%arg0: i32, %arg1: memref<32x32xf32, #tpu.memory_space<vmem>>, %arg2: memref<32x1xf32, #tpu.memory_space<vmem>>, %arg3: memref<32x1xf32, #tpu.memory_space<vmem>>) attributes {dimension_semantics = [#tpu.dimension_semantics<arbitrary>], iteration_bounds = array<i64: 1>, scalar_prefetch = 0 : i64, scratch_operands = 0 : i64, tpu.core_type = #tpu.core_type<tc>, window_params = [{transform_indices = @transform_0, window_bounds = array<i64: 32, 32>}, {pipeline_mode = #tpu.pipeline_mode<synchronous>, transform_indices = @transform_1, window_bounds = array<i64: 32, 1>}, {pipeline_mode = #tpu.pipeline_mode<synchronous>, transform_indices = @transform_2, window_bounds = array<i64: 32, 1>}]} {
    %c0_i32 = arith.constant 0 : i32
    %0 = arith.cmpi eq, %arg0, %c0_i32 : i32
    %1 = arith.extui %0 : i1 to i32
    %c0_i32_0 = arith.constant 0 : i32
    %2 = arith.cmpi ne, %1, %c0_i32_0 : i32
    scf.if %2 {
      %cst_11 = arith.constant 0.000000e+00 : f32
      %15 = vector.broadcast %cst_11 : f32 to vector<32x1xf32>
      %c0_12 = arith.constant 0 : index
      %c0_13 = arith.constant 0 : index
      %16 = vector.load %arg2[%c0_12, %c0_13] : memref<32x1xf32, #tpu.memory_space<vmem>>, vector<32x1xf32>
      tpu.vector_store %arg2[%c0_12, %c0_13], %15 {strides = array<i32>} : memref<32x1xf32, #tpu.memory_space<vmem>>, vector<32x1xf32>,
      %cst_14 = arith.constant 0.000000e+00 : f32
      %17 = vector.broadcast %cst_14 : f32 to vector<32x1xf32>
      %c0_15 = arith.constant 0 : index
      %c0_16 = arith.constant 0 : index
      %18 = vector.load %arg3[%c0_15, %c0_16] : memref<32x1xf32, #tpu.memory_space<vmem>>, vector<32x1xf32>
      tpu.vector_store %arg3[%c0_15, %c0_16], %17 {strides = array<i32>} : memref<32x1xf32, #tpu.memory_space<vmem>>, vector<32x1xf32>,
    } else {
    }
    %c0 = arith.constant 0 : index
    %c0_1 = arith.constant 0 : index
    %3 = vector.load %arg1[%c0, %c0_1] : memref<32x32xf32, #tpu.memory_space<vmem>>, vector<32x32xf32>
    %c0_2 = arith.constant 0 : index
    %c0_3 = arith.constant 0 : index
    %4 = vector.load %arg2[%c0_2, %c0_3] : memref<32x1xf32, #tpu.memory_space<vmem>>, vector<32x1xf32>
    %cst = arith.constant dense<0.000000e+00> : vector<32xf32>
    %5 = vector.multi_reduction <add>, %3, %cst [1] : vector<32x32xf32> to vector<32xf32>
    %6 = vector.shape_cast %5 : vector<32xf32> to vector<32x1xf32>
    %7 = arith.addf %4, %6 : vector<32x1xf32>
    %c0_4 = arith.constant 0 : index
    %c0_5 = arith.constant 0 : index
    %8 = vector.load %arg2[%c0_4, %c0_5] : memref<32x1xf32, #tpu.memory_space<vmem>>, vector<32x1xf32>
    tpu.vector_store %arg2[%c0_4, %c0_5], %7 {strides = array<i32>} : memref<32x1xf32, #tpu.memory_space<vmem>>, vector<32x1xf32>,
    %c0_6 = arith.constant 0 : index
    %c0_7 = arith.constant 0 : index
    %9 = vector.load %arg3[%c0_6, %c0_7] : memref<32x1xf32, #tpu.memory_space<vmem>>, vector<32x1xf32>
    %10 = arith.mulf %3, %3 : vector<32x32xf32>
    %cst_8 = arith.constant dense<0.000000e+00> : vector<32xf32>
    %11 = vector.multi_reduction <add>, %10, %cst_8 [1] : vector<32x32xf32> to vector<32xf32>
    %12 = vector.shape_cast %11 : vector<32xf32> to vector<32x1xf32>
    %13 = arith.addf %9, %12 : vector<32x1xf32>
    %c0_9 = arith.constant 0 : index
    %c0_10 = arith.constant 0 : index
    %14 = vector.load %arg3[%c0_9, %c0_10] : memref<32x1xf32, #tpu.memory_space<vmem>>, vector<32x1xf32>
    tpu.vector_store %arg3[%c0_9, %c0_10], %13 {strides = array<i32>} : memref<32x1xf32, #tpu.memory_space<vmem>>, vector<32x1xf32>,
    return
  }
  func.func @transform_0(%arg0: i32) -> (i32, i32) {
    %c0_i32 = arith.constant 0 : i32
    %c0_i32_0 = arith.constant 0 : i32
    return %c0_i32, %arg0 : i32, i32
  }
  func.func @transform_1(%arg0: i32) -> (i32, i32) {
    %c0_i32 = arith.constant 0 : i32
    %c0_i32_0 = arith.constant 0 : i32
    %c0_i32_1 = arith.constant 0 : i32
    return %c0_i32, %c0_i32_0 : i32, i32
  }
  func.func @transform_2(%arg0: i32) -> (i32, i32) {
    %c0_i32 = arith.constant 0 : i32
    %c0_i32_0 = arith.constant 0 : i32
    %c0_i32_1 = arith.constant 0 : i32
    return %c0_i32, %c0_i32_0 : i32, i32
  }
}

module attributes {stable_mosaic.version = 11 : i64} {
  func.func @_bn_apply_kernel(%arg0: i32, %arg1: memref<32x32xf32, #tpu.memory_space<vmem>>, %arg2: memref<32x1xf32, #tpu.memory_space<vmem>>, %arg3: memref<32x1xf32, #tpu.memory_space<vmem>>, %arg4: memref<32x1xf32, #tpu.memory_space<vmem>>, %arg5: memref<32x1xf32, #tpu.memory_space<vmem>>, %arg6: memref<32x32xf32, #tpu.memory_space<vmem>>) attributes {dimension_semantics = [#tpu.dimension_semantics<parallel>], iteration_bounds = array<i64: 1>, scalar_prefetch = 0 : i64, scratch_operands = 0 : i64, tpu.core_type = #tpu.core_type<tc>, window_params = [{transform_indices = @transform_0, window_bounds = array<i64: 32, 32>}, {pipeline_mode = #tpu.pipeline_mode<synchronous>, transform_indices = @transform_1, window_bounds = array<i64: 32, 1>}, {pipeline_mode = #tpu.pipeline_mode<synchronous>, transform_indices = @transform_2, window_bounds = array<i64: 32, 1>}, {pipeline_mode = #tpu.pipeline_mode<synchronous>, transform_indices = @transform_3, window_bounds = array<i64: 32, 1>}, {pipeline_mode = #tpu.pipeline_mode<synchronous>, transform_indices = @transform_4, window_bounds = array<i64: 32, 1>}, {transform_indices = @transform_5, window_bounds = array<i64: 32, 32>}]} {
    %c0 = arith.constant 0 : index
    %c0_0 = arith.constant 0 : index
    %0 = vector.load %arg2[%c0, %c0_0] : memref<32x1xf32, #tpu.memory_space<vmem>>, vector<32x1xf32>
    %cst = arith.constant 3.125000e-02 : f32
    %1 = vector.broadcast %cst : f32 to vector<32x1xf32>
    %2 = arith.mulf %0, %1 : vector<32x1xf32>
    %c0_1 = arith.constant 0 : index
    %c0_2 = arith.constant 0 : index
    %3 = vector.load %arg3[%c0_1, %c0_2] : memref<32x1xf32, #tpu.memory_space<vmem>>, vector<32x1xf32>
    %cst_3 = arith.constant 3.125000e-02 : f32
    %4 = vector.broadcast %cst_3 : f32 to vector<32x1xf32>
    %5 = arith.mulf %3, %4 : vector<32x1xf32>
    %6 = arith.mulf %2, %2 : vector<32x1xf32>
    %7 = arith.subf %5, %6 : vector<32x1xf32>
    %cst_4 = arith.constant 0.000000e+00 : f32
    %8 = vector.broadcast %cst_4 : f32 to vector<32x1xf32>
    %9 = arith.maximumf %7, %8 : vector<32x1xf32>
    %c0_5 = arith.constant 0 : index
    %c0_6 = arith.constant 0 : index
    %10 = vector.load %arg4[%c0_5, %c0_6] : memref<32x1xf32, #tpu.memory_space<vmem>>, vector<32x1xf32>
    %cst_7 = arith.constant 9.99999974E-6 : f32
    %11 = vector.broadcast %cst_7 : f32 to vector<32x1xf32>
    %12 = arith.addf %9, %11 : vector<32x1xf32>
    %13 = math.rsqrt %12 : vector<32x1xf32>
    %14 = arith.mulf %10, %13 : vector<32x1xf32>
    %c0_8 = arith.constant 0 : index
    %c0_9 = arith.constant 0 : index
    %15 = vector.load %arg5[%c0_8, %c0_9] : memref<32x1xf32, #tpu.memory_space<vmem>>, vector<32x1xf32>
    %16 = arith.mulf %2, %14 : vector<32x1xf32>
    %17 = arith.subf %15, %16 : vector<32x1xf32>
    %c0_10 = arith.constant 0 : index
    %c0_11 = arith.constant 0 : index
    %18 = vector.load %arg1[%c0_10, %c0_11] : memref<32x32xf32, #tpu.memory_space<vmem>>, vector<32x32xf32>
    %19 = vector.broadcast %14 : vector<32x1xf32> to vector<32x32xf32>
    %20 = arith.mulf %18, %19 : vector<32x32xf32>
    %21 = vector.broadcast %17 : vector<32x1xf32> to vector<32x32xf32>
    %22 = arith.addf %20, %21 : vector<32x32xf32>
    %cst_12 = arith.constant 0.000000e+00 : f32
    %23 = vector.broadcast %cst_12 : f32 to vector<32x32xf32>
    %24 = arith.maximumf %22, %23 : vector<32x32xf32>
    %c0_13 = arith.constant 0 : index
    %c0_14 = arith.constant 0 : index
    %25 = vector.load %arg6[%c0_13, %c0_14] : memref<32x32xf32, #tpu.memory_space<vmem>>, vector<32x32xf32>
    tpu.vector_store %arg6[%c0_13, %c0_14], %24 {strides = array<i32>} : memref<32x32xf32, #tpu.memory_space<vmem>>, vector<32x32xf32>,
    return
  }
  func.func @transform_0(%arg0: i32) -> (i32, i32) {
    %c0_i32 = arith.constant 0 : i32
    %c0_i32_0 = arith.constant 0 : i32
    return %c0_i32, %arg0 : i32, i32
  }
  func.func @transform_1(%arg0: i32) -> (i32, i32) {
    %c0_i32 = arith.constant 0 : i32
    %c0_i32_0 = arith.constant 0 : i32
    %c0_i32_1 = arith.constant 0 : i32
    return %c0_i32, %c0_i32_0 : i32, i32
  }
  func.func @transform_2(%arg0: i32) -> (i32, i32) {
    %c0_i32 = arith.constant 0 : i32
    %c0_i32_0 = arith.constant 0 : i32
    %c0_i32_1 = arith.constant 0 : i32
    return %c0_i32, %c0_i32_0 : i32, i32
  }
  func.func @transform_3(%arg0: i32) -> (i32, i32) {
    %c0_i32 = arith.constant 0 : i32
    %c0_i32_0 = arith.constant 0 : i32
    %c0_i32_1 = arith.constant 0 : i32
    return %c0_i32, %c0_i32_0 : i32, i32
  }
  func.func @transform_4(%arg0: i32) -> (i32, i32) {
    %c0_i32 = arith.constant 0 : i32
    %c0_i32_0 = arith.constant 0 : i32
    %c0_i32_1 = arith.constant 0 : i32
    return %c0_i32, %c0_i32_0 : i32, i32
  }
  func.func @transform_5(%arg0: i32) -> (i32, i32) {
    %c0_i32 = arith.constant 0 : i32
    %c0_i32_0 = arith.constant 0 : i32
    return %c0_i32, %arg0 : i32, i32
  }
}

module attributes {stable_mosaic.version = 11 : i64} {
  func.func @_matmul_kernel(%arg0: i32, %arg1: memref<16x128xbf16, #tpu.memory_space<vmem>>, %arg2: memref<128x32xbf16, #tpu.memory_space<vmem>>, %arg3: memref<16x32xf32, #tpu.memory_space<vmem>>) attributes {dimension_semantics = [#tpu.dimension_semantics<parallel>], iteration_bounds = array<i64: 1>, scalar_prefetch = 0 : i64, scratch_operands = 0 : i64, tpu.core_type = #tpu.core_type<tc>, window_params = [{pipeline_mode = #tpu.pipeline_mode<synchronous>, transform_indices = @transform_0, window_bounds = array<i64: 16, 128>}, {transform_indices = @transform_1, window_bounds = array<i64: 128, 32>}, {transform_indices = @transform_2, window_bounds = array<i64: 16, 32>}]} {
    %c0 = arith.constant 0 : index
    %c0_0 = arith.constant 0 : index
    %0 = vector.load %arg1[%c0, %c0_0] : memref<16x128xbf16, #tpu.memory_space<vmem>>, vector<16x128xbf16>
    %c0_1 = arith.constant 0 : index
    %c0_2 = arith.constant 0 : index
    %1 = vector.load %arg2[%c0_1, %c0_2] : memref<128x32xbf16, #tpu.memory_space<vmem>>, vector<128x32xbf16>
    %cst = arith.constant dense<0.000000e+00> : vector<16x32xf32>
    %2 = tpu.matmul %0, %1, %cst {dimension_numbers = #tpu.dot_dimension_numbers<[1], [0], [0], [1], [0, 0, 1, 1], [], []>} : vector<16x128xbf16>, vector<128x32xbf16>, vector<16x32xf32> -> vector<16x32xf32>
    %c0_3 = arith.constant 0 : index
    %c0_4 = arith.constant 0 : index
    %3 = vector.load %arg3[%c0_3, %c0_4] : memref<16x32xf32, #tpu.memory_space<vmem>>, vector<16x32xf32>
    tpu.vector_store %arg3[%c0_3, %c0_4], %2 {strides = array<i32>} : memref<16x32xf32, #tpu.memory_space<vmem>>, vector<16x32xf32>,
    return
  }
  func.func @transform_0(%arg0: i32) -> (i32, i32) {
    %c0_i32 = arith.constant 0 : i32
    %c0_i32_0 = arith.constant 0 : i32
    %c0_i32_1 = arith.constant 0 : i32
    return %c0_i32, %c0_i32_0 : i32, i32
  }
  func.func @transform_1(%arg0: i32) -> (i32, i32) {
    %c0_i32 = arith.constant 0 : i32
    %c0_i32_0 = arith.constant 0 : i32
    return %c0_i32, %arg0 : i32, i32
  }
  func.func @transform_2(%arg0: i32) -> (i32, i32) {
    %c0_i32 = arith.constant 0 : i32
    %c0_i32_0 = arith.constant 0 : i32
    return %c0_i32, %arg0 : i32, i32
  }
}

module attributes {stable_mosaic.version = 11 : i64} {
  func.func @_bn_stats_kernel(%arg0: i32, %arg1: memref<16x128xf32, #tpu.memory_space<vmem>>, %arg2: memref<16x1xf32, #tpu.memory_space<vmem>>, %arg3: memref<16x1xf32, #tpu.memory_space<vmem>>) attributes {dimension_semantics = [#tpu.dimension_semantics<arbitrary>], iteration_bounds = array<i64: 1>, scalar_prefetch = 0 : i64, scratch_operands = 0 : i64, tpu.core_type = #tpu.core_type<tc>, window_params = [{transform_indices = @transform_0, window_bounds = array<i64: 16, 128>}, {pipeline_mode = #tpu.pipeline_mode<synchronous>, transform_indices = @transform_1, window_bounds = array<i64: 16, 1>}, {pipeline_mode = #tpu.pipeline_mode<synchronous>, transform_indices = @transform_2, window_bounds = array<i64: 16, 1>}]} {
    %c0_i32 = arith.constant 0 : i32
    %0 = arith.cmpi eq, %arg0, %c0_i32 : i32
    %1 = arith.extui %0 : i1 to i32
    %c0_i32_0 = arith.constant 0 : i32
    %2 = arith.cmpi ne, %1, %c0_i32_0 : i32
    scf.if %2 {
      %cst_11 = arith.constant 0.000000e+00 : f32
      %15 = vector.broadcast %cst_11 : f32 to vector<16x1xf32>
      %c0_12 = arith.constant 0 : index
      %c0_13 = arith.constant 0 : index
      %16 = vector.load %arg2[%c0_12, %c0_13] : memref<16x1xf32, #tpu.memory_space<vmem>>, vector<16x1xf32>
      tpu.vector_store %arg2[%c0_12, %c0_13], %15 {strides = array<i32>} : memref<16x1xf32, #tpu.memory_space<vmem>>, vector<16x1xf32>,
      %cst_14 = arith.constant 0.000000e+00 : f32
      %17 = vector.broadcast %cst_14 : f32 to vector<16x1xf32>
      %c0_15 = arith.constant 0 : index
      %c0_16 = arith.constant 0 : index
      %18 = vector.load %arg3[%c0_15, %c0_16] : memref<16x1xf32, #tpu.memory_space<vmem>>, vector<16x1xf32>
      tpu.vector_store %arg3[%c0_15, %c0_16], %17 {strides = array<i32>} : memref<16x1xf32, #tpu.memory_space<vmem>>, vector<16x1xf32>,
    } else {
    }
    %c0 = arith.constant 0 : index
    %c0_1 = arith.constant 0 : index
    %3 = vector.load %arg1[%c0, %c0_1] : memref<16x128xf32, #tpu.memory_space<vmem>>, vector<16x128xf32>
    %c0_2 = arith.constant 0 : index
    %c0_3 = arith.constant 0 : index
    %4 = vector.load %arg2[%c0_2, %c0_3] : memref<16x1xf32, #tpu.memory_space<vmem>>, vector<16x1xf32>
    %cst = arith.constant dense<0.000000e+00> : vector<16xf32>
    %5 = vector.multi_reduction <add>, %3, %cst [1] : vector<16x128xf32> to vector<16xf32>
    %6 = vector.shape_cast %5 : vector<16xf32> to vector<16x1xf32>
    %7 = arith.addf %4, %6 : vector<16x1xf32>
    %c0_4 = arith.constant 0 : index
    %c0_5 = arith.constant 0 : index
    %8 = vector.load %arg2[%c0_4, %c0_5] : memref<16x1xf32, #tpu.memory_space<vmem>>, vector<16x1xf32>
    tpu.vector_store %arg2[%c0_4, %c0_5], %7 {strides = array<i32>} : memref<16x1xf32, #tpu.memory_space<vmem>>, vector<16x1xf32>,
    %c0_6 = arith.constant 0 : index
    %c0_7 = arith.constant 0 : index
    %9 = vector.load %arg3[%c0_6, %c0_7] : memref<16x1xf32, #tpu.memory_space<vmem>>, vector<16x1xf32>
    %10 = arith.mulf %3, %3 : vector<16x128xf32>
    %cst_8 = arith.constant dense<0.000000e+00> : vector<16xf32>
    %11 = vector.multi_reduction <add>, %10, %cst_8 [1] : vector<16x128xf32> to vector<16xf32>
    %12 = vector.shape_cast %11 : vector<16xf32> to vector<16x1xf32>
    %13 = arith.addf %9, %12 : vector<16x1xf32>
    %c0_9 = arith.constant 0 : index
    %c0_10 = arith.constant 0 : index
    %14 = vector.load %arg3[%c0_9, %c0_10] : memref<16x1xf32, #tpu.memory_space<vmem>>, vector<16x1xf32>
    tpu.vector_store %arg3[%c0_9, %c0_10], %13 {strides = array<i32>} : memref<16x1xf32, #tpu.memory_space<vmem>>, vector<16x1xf32>,
    return
  }
  func.func @transform_0(%arg0: i32) -> (i32, i32) {
    %c0_i32 = arith.constant 0 : i32
    %c0_i32_0 = arith.constant 0 : i32
    return %c0_i32, %arg0 : i32, i32
  }
  func.func @transform_1(%arg0: i32) -> (i32, i32) {
    %c0_i32 = arith.constant 0 : i32
    %c0_i32_0 = arith.constant 0 : i32
    %c0_i32_1 = arith.constant 0 : i32
    return %c0_i32, %c0_i32_0 : i32, i32
  }
  func.func @transform_2(%arg0: i32) -> (i32, i32) {
    %c0_i32 = arith.constant 0 : i32
    %c0_i32_0 = arith.constant 0 : i32
    %c0_i32_1 = arith.constant 0 : i32
    return %c0_i32, %c0_i32_0 : i32, i32
  }
}

module attributes {stable_mosaic.version = 11 : i64} {
  func.func @_bn_apply_kernel(%arg0: i32, %arg1: memref<16x128xf32, #tpu.memory_space<vmem>>, %arg2: memref<16x1xf32, #tpu.memory_space<vmem>>, %arg3: memref<16x1xf32, #tpu.memory_space<vmem>>, %arg4: memref<16x1xf32, #tpu.memory_space<vmem>>, %arg5: memref<16x1xf32, #tpu.memory_space<vmem>>, %arg6: memref<16x128xf32, #tpu.memory_space<vmem>>) attributes {dimension_semantics = [#tpu.dimension_semantics<parallel>], iteration_bounds = array<i64: 1>, scalar_prefetch = 0 : i64, scratch_operands = 0 : i64, tpu.core_type = #tpu.core_type<tc>, window_params = [{transform_indices = @transform_0, window_bounds = array<i64: 16, 128>}, {pipeline_mode = #tpu.pipeline_mode<synchronous>, transform_indices = @transform_1, window_bounds = array<i64: 16, 1>}, {pipeline_mode = #tpu.pipeline_mode<synchronous>, transform_indices = @transform_2, window_bounds = array<i64: 16, 1>}, {pipeline_mode = #tpu.pipeline_mode<synchronous>, transform_indices = @transform_3, window_bounds = array<i64: 16, 1>}, {pipeline_mode = #tpu.pipeline_mode<synchronous>, transform_indices = @transform_4, window_bounds = array<i64: 16, 1>}, {transform_indices = @transform_5, window_bounds = array<i64: 16, 128>}]} {
    %c0 = arith.constant 0 : index
    %c0_0 = arith.constant 0 : index
    %0 = vector.load %arg2[%c0, %c0_0] : memref<16x1xf32, #tpu.memory_space<vmem>>, vector<16x1xf32>
    %cst = arith.constant 7.812500e-03 : f32
    %1 = vector.broadcast %cst : f32 to vector<16x1xf32>
    %2 = arith.mulf %0, %1 : vector<16x1xf32>
    %c0_1 = arith.constant 0 : index
    %c0_2 = arith.constant 0 : index
    %3 = vector.load %arg3[%c0_1, %c0_2] : memref<16x1xf32, #tpu.memory_space<vmem>>, vector<16x1xf32>
    %cst_3 = arith.constant 7.812500e-03 : f32
    %4 = vector.broadcast %cst_3 : f32 to vector<16x1xf32>
    %5 = arith.mulf %3, %4 : vector<16x1xf32>
    %6 = arith.mulf %2, %2 : vector<16x1xf32>
    %7 = arith.subf %5, %6 : vector<16x1xf32>
    %cst_4 = arith.constant 0.000000e+00 : f32
    %8 = vector.broadcast %cst_4 : f32 to vector<16x1xf32>
    %9 = arith.maximumf %7, %8 : vector<16x1xf32>
    %c0_5 = arith.constant 0 : index
    %c0_6 = arith.constant 0 : index
    %10 = vector.load %arg4[%c0_5, %c0_6] : memref<16x1xf32, #tpu.memory_space<vmem>>, vector<16x1xf32>
    %cst_7 = arith.constant 9.99999974E-6 : f32
    %11 = vector.broadcast %cst_7 : f32 to vector<16x1xf32>
    %12 = arith.addf %9, %11 : vector<16x1xf32>
    %13 = math.rsqrt %12 : vector<16x1xf32>
    %14 = arith.mulf %10, %13 : vector<16x1xf32>
    %c0_8 = arith.constant 0 : index
    %c0_9 = arith.constant 0 : index
    %15 = vector.load %arg5[%c0_8, %c0_9] : memref<16x1xf32, #tpu.memory_space<vmem>>, vector<16x1xf32>
    %16 = arith.mulf %2, %14 : vector<16x1xf32>
    %17 = arith.subf %15, %16 : vector<16x1xf32>
    %c0_10 = arith.constant 0 : index
    %c0_11 = arith.constant 0 : index
    %18 = vector.load %arg1[%c0_10, %c0_11] : memref<16x128xf32, #tpu.memory_space<vmem>>, vector<16x128xf32>
    %19 = vector.broadcast %14 : vector<16x1xf32> to vector<16x128xf32>
    %20 = arith.mulf %18, %19 : vector<16x128xf32>
    %21 = vector.broadcast %17 : vector<16x1xf32> to vector<16x128xf32>
    %22 = arith.addf %20, %21 : vector<16x128xf32>
    %cst_12 = arith.constant 0.000000e+00 : f32
    %23 = vector.broadcast %cst_12 : f32 to vector<16x128xf32>
    %24 = arith.maximumf %22, %23 : vector<16x128xf32>
    %c0_13 = arith.constant 0 : index
    %c0_14 = arith.constant 0 : index
    %25 = vector.load %arg6[%c0_13, %c0_14] : memref<16x128xf32, #tpu.memory_space<vmem>>, vector<16x128xf32>
    tpu.vector_store %arg6[%c0_13, %c0_14], %24 {strides = array<i32>} : memref<16x128xf32, #tpu.memory_space<vmem>>, vector<16x128xf32>,
    return
  }
  func.func @transform_0(%arg0: i32) -> (i32, i32) {
    %c0_i32 = arith.constant 0 : i32
    %c0_i32_0 = arith.constant 0 : i32
    return %c0_i32, %arg0 : i32, i32
  }
  func.func @transform_1(%arg0: i32) -> (i32, i32) {
    %c0_i32 = arith.constant 0 : i32
    %c0_i32_0 = arith.constant 0 : i32
    %c0_i32_1 = arith.constant 0 : i32
    return %c0_i32, %c0_i32_0 : i32, i32
  }
  func.func @transform_2(%arg0: i32) -> (i32, i32) {
    %c0_i32 = arith.constant 0 : i32
    %c0_i32_0 = arith.constant 0 : i32
    %c0_i32_1 = arith.constant 0 : i32
    return %c0_i32, %c0_i32_0 : i32, i32
  }
  func.func @transform_3(%arg0: i32) -> (i32, i32) {
    %c0_i32 = arith.constant 0 : i32
    %c0_i32_0 = arith.constant 0 : i32
    %c0_i32_1 = arith.constant 0 : i32
    return %c0_i32, %c0_i32_0 : i32, i32
  }
  func.func @transform_4(%arg0: i32) -> (i32, i32) {
    %c0_i32 = arith.constant 0 : i32
    %c0_i32_0 = arith.constant 0 : i32
    %c0_i32_1 = arith.constant 0 : i32
    return %c0_i32, %c0_i32_0 : i32, i32
  }
  func.func @transform_5(%arg0: i32) -> (i32, i32) {
    %c0_i32 = arith.constant 0 : i32
    %c0_i32_0 = arith.constant 0 : i32
    return %c0_i32, %arg0 : i32, i32
  }
}

module attributes {stable_mosaic.version = 11 : i64} {
  func.func @_matmul_kernel(%arg0: i32, %arg1: memref<8x64xbf16, #tpu.memory_space<vmem>>, %arg2: memref<64x128xbf16, #tpu.memory_space<vmem>>, %arg3: memref<8x128xf32, #tpu.memory_space<vmem>>) attributes {dimension_semantics = [#tpu.dimension_semantics<parallel>], iteration_bounds = array<i64: 1>, scalar_prefetch = 0 : i64, scratch_operands = 0 : i64, tpu.core_type = #tpu.core_type<tc>, window_params = [{pipeline_mode = #tpu.pipeline_mode<synchronous>, transform_indices = @transform_0, window_bounds = array<i64: 8, 64>}, {transform_indices = @transform_1, window_bounds = array<i64: 64, 128>}, {transform_indices = @transform_2, window_bounds = array<i64: 8, 128>}]} {
    %c0 = arith.constant 0 : index
    %c0_0 = arith.constant 0 : index
    %0 = vector.load %arg1[%c0, %c0_0] : memref<8x64xbf16, #tpu.memory_space<vmem>>, vector<8x64xbf16>
    %c0_1 = arith.constant 0 : index
    %c0_2 = arith.constant 0 : index
    %1 = vector.load %arg2[%c0_1, %c0_2] : memref<64x128xbf16, #tpu.memory_space<vmem>>, vector<64x128xbf16>
    %cst = arith.constant dense<0.000000e+00> : vector<8x128xf32>
    %2 = tpu.matmul %0, %1, %cst {dimension_numbers = #tpu.dot_dimension_numbers<[1], [0], [0], [1], [0, 0, 1, 1], [], []>} : vector<8x64xbf16>, vector<64x128xbf16>, vector<8x128xf32> -> vector<8x128xf32>
    %c0_3 = arith.constant 0 : index
    %c0_4 = arith.constant 0 : index
    %3 = vector.load %arg3[%c0_3, %c0_4] : memref<8x128xf32, #tpu.memory_space<vmem>>, vector<8x128xf32>
    tpu.vector_store %arg3[%c0_3, %c0_4], %2 {strides = array<i32>} : memref<8x128xf32, #tpu.memory_space<vmem>>, vector<8x128xf32>,
    return
  }
  func.func @transform_0(%arg0: i32) -> (i32, i32) {
    %c0_i32 = arith.constant 0 : i32
    %c0_i32_0 = arith.constant 0 : i32
    %c0_i32_1 = arith.constant 0 : i32
    return %c0_i32, %c0_i32_0 : i32, i32
  }
  func.func @transform_1(%arg0: i32) -> (i32, i32) {
    %c0_i32 = arith.constant 0 : i32
    %c0_i32_0 = arith.constant 0 : i32
    return %c0_i32, %arg0 : i32, i32
  }
  func.func @transform_2(%arg0: i32) -> (i32, i32) {
    %c0_i32 = arith.constant 0 : i32
    %c0_i32_0 = arith.constant 0 : i32
    return %c0_i32, %arg0 : i32, i32
  }
}

module attributes {stable_mosaic.version = 11 : i64} {
  func.func @_bn_stats_kernel(%arg0: i32, %arg1: memref<8x512xf32, #tpu.memory_space<vmem>>, %arg2: memref<8x1xf32, #tpu.memory_space<vmem>>, %arg3: memref<8x1xf32, #tpu.memory_space<vmem>>) attributes {dimension_semantics = [#tpu.dimension_semantics<arbitrary>], iteration_bounds = array<i64: 1>, scalar_prefetch = 0 : i64, scratch_operands = 0 : i64, tpu.core_type = #tpu.core_type<tc>, window_params = [{transform_indices = @transform_0, window_bounds = array<i64: 8, 512>}, {pipeline_mode = #tpu.pipeline_mode<synchronous>, transform_indices = @transform_1, window_bounds = array<i64: 8, 1>}, {pipeline_mode = #tpu.pipeline_mode<synchronous>, transform_indices = @transform_2, window_bounds = array<i64: 8, 1>}]} {
    %c0_i32 = arith.constant 0 : i32
    %0 = arith.cmpi eq, %arg0, %c0_i32 : i32
    %1 = arith.extui %0 : i1 to i32
    %c0_i32_0 = arith.constant 0 : i32
    %2 = arith.cmpi ne, %1, %c0_i32_0 : i32
    scf.if %2 {
      %cst_11 = arith.constant 0.000000e+00 : f32
      %15 = vector.broadcast %cst_11 : f32 to vector<8x1xf32>
      %c0_12 = arith.constant 0 : index
      %c0_13 = arith.constant 0 : index
      %16 = vector.load %arg2[%c0_12, %c0_13] : memref<8x1xf32, #tpu.memory_space<vmem>>, vector<8x1xf32>
      tpu.vector_store %arg2[%c0_12, %c0_13], %15 {strides = array<i32>} : memref<8x1xf32, #tpu.memory_space<vmem>>, vector<8x1xf32>,
      %cst_14 = arith.constant 0.000000e+00 : f32
      %17 = vector.broadcast %cst_14 : f32 to vector<8x1xf32>
      %c0_15 = arith.constant 0 : index
      %c0_16 = arith.constant 0 : index
      %18 = vector.load %arg3[%c0_15, %c0_16] : memref<8x1xf32, #tpu.memory_space<vmem>>, vector<8x1xf32>
      tpu.vector_store %arg3[%c0_15, %c0_16], %17 {strides = array<i32>} : memref<8x1xf32, #tpu.memory_space<vmem>>, vector<8x1xf32>,
    } else {
    }
    %c0 = arith.constant 0 : index
    %c0_1 = arith.constant 0 : index
    %3 = vector.load %arg1[%c0, %c0_1] : memref<8x512xf32, #tpu.memory_space<vmem>>, vector<8x512xf32>
    %c0_2 = arith.constant 0 : index
    %c0_3 = arith.constant 0 : index
    %4 = vector.load %arg2[%c0_2, %c0_3] : memref<8x1xf32, #tpu.memory_space<vmem>>, vector<8x1xf32>
    %cst = arith.constant dense<0.000000e+00> : vector<8xf32>
    %5 = vector.multi_reduction <add>, %3, %cst [1] : vector<8x512xf32> to vector<8xf32>
    %6 = vector.shape_cast %5 : vector<8xf32> to vector<8x1xf32>
    %7 = arith.addf %4, %6 : vector<8x1xf32>
    %c0_4 = arith.constant 0 : index
    %c0_5 = arith.constant 0 : index
    %8 = vector.load %arg2[%c0_4, %c0_5] : memref<8x1xf32, #tpu.memory_space<vmem>>, vector<8x1xf32>
    tpu.vector_store %arg2[%c0_4, %c0_5], %7 {strides = array<i32>} : memref<8x1xf32, #tpu.memory_space<vmem>>, vector<8x1xf32>,
    %c0_6 = arith.constant 0 : index
    %c0_7 = arith.constant 0 : index
    %9 = vector.load %arg3[%c0_6, %c0_7] : memref<8x1xf32, #tpu.memory_space<vmem>>, vector<8x1xf32>
    %10 = arith.mulf %3, %3 : vector<8x512xf32>
    %cst_8 = arith.constant dense<0.000000e+00> : vector<8xf32>
    %11 = vector.multi_reduction <add>, %10, %cst_8 [1] : vector<8x512xf32> to vector<8xf32>
    %12 = vector.shape_cast %11 : vector<8xf32> to vector<8x1xf32>
    %13 = arith.addf %9, %12 : vector<8x1xf32>
    %c0_9 = arith.constant 0 : index
    %c0_10 = arith.constant 0 : index
    %14 = vector.load %arg3[%c0_9, %c0_10] : memref<8x1xf32, #tpu.memory_space<vmem>>, vector<8x1xf32>
    tpu.vector_store %arg3[%c0_9, %c0_10], %13 {strides = array<i32>} : memref<8x1xf32, #tpu.memory_space<vmem>>, vector<8x1xf32>,
    return
  }
  func.func @transform_0(%arg0: i32) -> (i32, i32) {
    %c0_i32 = arith.constant 0 : i32
    %c0_i32_0 = arith.constant 0 : i32
    return %c0_i32, %arg0 : i32, i32
  }
  func.func @transform_1(%arg0: i32) -> (i32, i32) {
    %c0_i32 = arith.constant 0 : i32
    %c0_i32_0 = arith.constant 0 : i32
    %c0_i32_1 = arith.constant 0 : i32
    return %c0_i32, %c0_i32_0 : i32, i32
  }
  func.func @transform_2(%arg0: i32) -> (i32, i32) {
    %c0_i32 = arith.constant 0 : i32
    %c0_i32_0 = arith.constant 0 : i32
    %c0_i32_1 = arith.constant 0 : i32
    return %c0_i32, %c0_i32_0 : i32, i32
  }
}

module attributes {stable_mosaic.version = 11 : i64} {
  func.func @_bn_apply_kernel(%arg0: i32, %arg1: memref<8x512xf32, #tpu.memory_space<vmem>>, %arg2: memref<8x1xf32, #tpu.memory_space<vmem>>, %arg3: memref<8x1xf32, #tpu.memory_space<vmem>>, %arg4: memref<8x1xf32, #tpu.memory_space<vmem>>, %arg5: memref<8x1xf32, #tpu.memory_space<vmem>>, %arg6: memref<8x512xf32, #tpu.memory_space<vmem>>) attributes {dimension_semantics = [#tpu.dimension_semantics<parallel>], iteration_bounds = array<i64: 1>, scalar_prefetch = 0 : i64, scratch_operands = 0 : i64, tpu.core_type = #tpu.core_type<tc>, window_params = [{transform_indices = @transform_0, window_bounds = array<i64: 8, 512>}, {pipeline_mode = #tpu.pipeline_mode<synchronous>, transform_indices = @transform_1, window_bounds = array<i64: 8, 1>}, {pipeline_mode = #tpu.pipeline_mode<synchronous>, transform_indices = @transform_2, window_bounds = array<i64: 8, 1>}, {pipeline_mode = #tpu.pipeline_mode<synchronous>, transform_indices = @transform_3, window_bounds = array<i64: 8, 1>}, {pipeline_mode = #tpu.pipeline_mode<synchronous>, transform_indices = @transform_4, window_bounds = array<i64: 8, 1>}, {transform_indices = @transform_5, window_bounds = array<i64: 8, 512>}]} {
    %c0 = arith.constant 0 : index
    %c0_0 = arith.constant 0 : index
    %0 = vector.load %arg2[%c0, %c0_0] : memref<8x1xf32, #tpu.memory_space<vmem>>, vector<8x1xf32>
    %cst = arith.constant 0.001953125 : f32
    %1 = vector.broadcast %cst : f32 to vector<8x1xf32>
    %2 = arith.mulf %0, %1 : vector<8x1xf32>
    %c0_1 = arith.constant 0 : index
    %c0_2 = arith.constant 0 : index
    %3 = vector.load %arg3[%c0_1, %c0_2] : memref<8x1xf32, #tpu.memory_space<vmem>>, vector<8x1xf32>
    %cst_3 = arith.constant 0.001953125 : f32
    %4 = vector.broadcast %cst_3 : f32 to vector<8x1xf32>
    %5 = arith.mulf %3, %4 : vector<8x1xf32>
    %6 = arith.mulf %2, %2 : vector<8x1xf32>
    %7 = arith.subf %5, %6 : vector<8x1xf32>
    %cst_4 = arith.constant 0.000000e+00 : f32
    %8 = vector.broadcast %cst_4 : f32 to vector<8x1xf32>
    %9 = arith.maximumf %7, %8 : vector<8x1xf32>
    %c0_5 = arith.constant 0 : index
    %c0_6 = arith.constant 0 : index
    %10 = vector.load %arg4[%c0_5, %c0_6] : memref<8x1xf32, #tpu.memory_space<vmem>>, vector<8x1xf32>
    %cst_7 = arith.constant 9.99999974E-6 : f32
    %11 = vector.broadcast %cst_7 : f32 to vector<8x1xf32>
    %12 = arith.addf %9, %11 : vector<8x1xf32>
    %13 = math.rsqrt %12 : vector<8x1xf32>
    %14 = arith.mulf %10, %13 : vector<8x1xf32>
    %c0_8 = arith.constant 0 : index
    %c0_9 = arith.constant 0 : index
    %15 = vector.load %arg5[%c0_8, %c0_9] : memref<8x1xf32, #tpu.memory_space<vmem>>, vector<8x1xf32>
    %16 = arith.mulf %2, %14 : vector<8x1xf32>
    %17 = arith.subf %15, %16 : vector<8x1xf32>
    %c0_10 = arith.constant 0 : index
    %c0_11 = arith.constant 0 : index
    %18 = vector.load %arg1[%c0_10, %c0_11] : memref<8x512xf32, #tpu.memory_space<vmem>>, vector<8x512xf32>
    %19 = vector.broadcast %14 : vector<8x1xf32> to vector<8x512xf32>
    %20 = arith.mulf %18, %19 : vector<8x512xf32>
    %21 = vector.broadcast %17 : vector<8x1xf32> to vector<8x512xf32>
    %22 = arith.addf %20, %21 : vector<8x512xf32>
    %cst_12 = arith.constant 0.000000e+00 : f32
    %23 = vector.broadcast %cst_12 : f32 to vector<8x512xf32>
    %24 = arith.maximumf %22, %23 : vector<8x512xf32>
    %c0_13 = arith.constant 0 : index
    %c0_14 = arith.constant 0 : index
    %25 = vector.load %arg6[%c0_13, %c0_14] : memref<8x512xf32, #tpu.memory_space<vmem>>, vector<8x512xf32>
    tpu.vector_store %arg6[%c0_13, %c0_14], %24 {strides = array<i32>} : memref<8x512xf32, #tpu.memory_space<vmem>>, vector<8x512xf32>,
    return
  }
  func.func @transform_0(%arg0: i32) -> (i32, i32) {
    %c0_i32 = arith.constant 0 : i32
    %c0_i32_0 = arith.constant 0 : i32
    return %c0_i32, %arg0 : i32, i32
  }
  func.func @transform_1(%arg0: i32) -> (i32, i32) {
    %c0_i32 = arith.constant 0 : i32
    %c0_i32_0 = arith.constant 0 : i32
    %c0_i32_1 = arith.constant 0 : i32
    return %c0_i32, %c0_i32_0 : i32, i32
  }
  func.func @transform_2(%arg0: i32) -> (i32, i32) {
    %c0_i32 = arith.constant 0 : i32
    %c0_i32_0 = arith.constant 0 : i32
    %c0_i32_1 = arith.constant 0 : i32
    return %c0_i32, %c0_i32_0 : i32, i32
  }
  func.func @transform_3(%arg0: i32) -> (i32, i32) {
    %c0_i32 = arith.constant 0 : i32
    %c0_i32_0 = arith.constant 0 : i32
    %c0_i32_1 = arith.constant 0 : i32
    return %c0_i32, %c0_i32_0 : i32, i32
  }
  func.func @transform_4(%arg0: i32) -> (i32, i32) {
    %c0_i32 = arith.constant 0 : i32
    %c0_i32_0 = arith.constant 0 : i32
    %c0_i32_1 = arith.constant 0 : i32
    return %c0_i32, %c0_i32_0 : i32, i32
  }
  func.func @transform_5(%arg0: i32) -> (i32, i32) {
    %c0_i32 = arith.constant 0 : i32
    %c0_i32_0 = arith.constant 0 : i32
    return %c0_i32, %arg0 : i32, i32
  }
}

module attributes {stable_mosaic.version = 11 : i64} {
  func.func @_matmul_kernel(%arg0: i32, %arg1: memref<3x32xbf16, #tpu.memory_space<vmem>>, %arg2: memref<32x512xbf16, #tpu.memory_space<vmem>>, %arg3: memref<3x512xf32, #tpu.memory_space<vmem>>) attributes {dimension_semantics = [#tpu.dimension_semantics<parallel>], iteration_bounds = array<i64: 1>, scalar_prefetch = 0 : i64, scratch_operands = 0 : i64, tpu.core_type = #tpu.core_type<tc>, window_params = [{pipeline_mode = #tpu.pipeline_mode<synchronous>, transform_indices = @transform_0, window_bounds = array<i64: 3, 32>}, {transform_indices = @transform_1, window_bounds = array<i64: 32, 512>}, {transform_indices = @transform_2, window_bounds = array<i64: 3, 512>}]} {
    %c0 = arith.constant 0 : index
    %c0_0 = arith.constant 0 : index
    %0 = vector.load %arg1[%c0, %c0_0] : memref<3x32xbf16, #tpu.memory_space<vmem>>, vector<3x32xbf16>
    %c0_1 = arith.constant 0 : index
    %c0_2 = arith.constant 0 : index
    %1 = vector.load %arg2[%c0_1, %c0_2] : memref<32x512xbf16, #tpu.memory_space<vmem>>, vector<32x512xbf16>
    %cst = arith.constant dense<0.000000e+00> : vector<3x512xf32>
    %2 = tpu.matmul %0, %1, %cst {dimension_numbers = #tpu.dot_dimension_numbers<[1], [0], [0], [1], [0, 0, 1, 1], [], []>} : vector<3x32xbf16>, vector<32x512xbf16>, vector<3x512xf32> -> vector<3x512xf32>
    %3 = math.tanh %2 : vector<3x512xf32>
    %c0_3 = arith.constant 0 : index
    %c0_4 = arith.constant 0 : index
    %4 = vector.load %arg3[%c0_3, %c0_4] : memref<3x512xf32, #tpu.memory_space<vmem>>, vector<3x512xf32>
    tpu.vector_store %arg3[%c0_3, %c0_4], %3 {strides = array<i32>} : memref<3x512xf32, #tpu.memory_space<vmem>>, vector<3x512xf32>,
    return
  }
  func.func @transform_0(%arg0: i32) -> (i32, i32) {
    %c0_i32 = arith.constant 0 : i32
    %c0_i32_0 = arith.constant 0 : i32
    %c0_i32_1 = arith.constant 0 : i32
    return %c0_i32, %c0_i32_0 : i32, i32
  }
  func.func @transform_1(%arg0: i32) -> (i32, i32) {
    %c0_i32 = arith.constant 0 : i32
    %c0_i32_0 = arith.constant 0 : i32
    return %c0_i32, %arg0 : i32, i32
  }
  func.func @transform_2(%arg0: i32) -> (i32, i32) {
    %c0_i32 = arith.constant 0 : i32
    %c0_i32_0 = arith.constant 0 : i32
    return %c0_i32, %arg0 : i32, i32
  }
}

</mosaic_0001>

<bundles_post_ra>
// kernel: generator_forward.18
= control target key start
LH: loop header
LB: loop body
LE: loop exit
PB: predicated region body
PF: predicated region fallthrough
CT: control target
= control target key end

     0   :  { %vm31_vm0 = vcmask 261120   ;;  %vm14_vm1 = vcmask 7168   ;;  %v90_v3 = vmov 0.0   ;;  %s214_s0 = inlined_call_operand.vmem [shape: f32[32,32], index: 0, kind: input, shape index: {}]   ;;  %s215_s1 = inlined_call_operand.vmem [shape: f32[32,1], index: 1, kind: output, shape index: {0}]   ;;  %s216_s2 = inlined_call_operand.vmem [shape: f32[32,1], index: 2, kind: output, shape index: {1}]  }
   0x1   :  { %v25_v0 = vld [vmem:[%s214_s0 + $0x10] sm:$0xff]  ;;  %v23_v1 = vld [vmem:[%s214_s0] sm:$0xff]  ;;  %v26_v2 = vld [vmem:[%s214_s0 + $0x18] sm:$0xff]  ;;  %17 = vst.msk [vmem:[%s215_s1 + $0x10] sm:$0xff] %vm14_vm1, %v90_v3 }
   0x2   :  { %15 = vst.msk [vmem:[%s215_s1] sm:$0xff] %vm14_vm1, %v90_v3  ;;  %16 = vst.msk [vmem:[%s215_s1 + $0x8] sm:$0xff] %vm14_vm1, %v90_v3  ;;  %v38_v4 = vsel %vm31_vm0, %v25_v0, 0.0  ;;  %v32_v5 = vsel %vm31_vm0, %v23_v1, 0.0  ;;  %v24_v6 = vld [vmem:[%s214_s0 + $0x8] sm:$0xff]  ;;  %v57_v7 = vmul.f32 %v23_v1, %v23_v1  ;;  %v41_v8 = vsel %vm31_vm0, %v26_v2, 0.0 }
   0x3   :  { %18 = vst.msk [vmem:[%s215_s1 + $0x18] sm:$0xff] %vm14_vm1, %v90_v3  ;;  %39 = vadd.xlane.f32.xlu1 %v38_v4  ;;  %33 = vadd.xlane.f32.xlu0 %v32_v5  ;;  %v35_v9 = vsel %vm31_vm0, %v24_v6, 0.0  ;;  %v58_v10 = vmul.f32 %v24_v6, %v24_v6  ;;  %v59_v11 = vmul.f32 %v25_v0, %v25_v0  ;;  %20 = vst.msk [vmem:[%s216_s2 + $0x8] sm:$0xff] %vm14_vm1, %v90_v3 }
   0x4   :  { %v61_v13 = vsel %vm31_vm0, %v57_v7, 0.0  ;;  %v60_v14 = vmul.f32 %v26_v2, %v26_v2  ;;  %19 = vst.msk [vmem:[%s216_s2] sm:$0xff] %vm14_vm1, %v90_v3  ;;  %21 = vst.msk [vmem:[%s216_s2 + $0x10] sm:$0xff] %vm14_vm1, %v90_v3 }
   0x5   :  { %v64_v12 = vsel %vm31_vm0, %v58_v10, 0.0  ;;  %v67_v16 = vsel %vm31_vm0, %v59_v11, 0.0  ;;  %22 = vst.msk [vmem:[%s216_s2 + $0x18] sm:$0xff] %vm14_vm1, %v90_v3 }
   0x6   :  { %v70_v15 = vsel %vm31_vm0, %v60_v14, 0.0 }
   0x7   :  { %42 = vadd.xlane.f32.xlu1 %v41_v8  ;;  %36 = vadd.xlane.f32.xlu0 %v35_v9 }
   0x8   :  { %v29_v17 = vld [vmem:[%s215_s1 + $0x10] sm:$0xff] }
   0x9   :  { %v27_v18 = vld [vmem:[%s215_s1] sm:$0xff]  ;;  %v28_v24 = vld [vmem:[%s215_s1 + $0x8] sm:$0xff] }
   0xa   :  { %v30_v23 = vld [vmem:[%s215_s1 + $0x18] sm:$0xff]  ;;  %v54_v29 = vld [vmem:[%s216_s2 + $0x8] sm:$0xff] }
   0xb   :  { %65 = vadd.xlane.f32.xlu1 %v64_v12  ;;  %62 = vadd.xlane.f32.xlu0 %v61_v13  ;;  %v53_v30 = vld [vmem:[%s216_s2] sm:$0xff]  ;;  %v55_v36 = vld [vmem:[%s216_s2 + $0x10] sm:$0xff] }
   0xc   :  { %v56_v35 = vld [vmem:[%s216_s2 + $0x18] sm:$0xff] }
   0xf   :  { %71 = vadd.xlane.f32.xlu1 %v70_v15  ;;  %68 = vadd.xlane.f32.xlu0 %v67_v16 }
  0x8c   :  { %v40_v19 = vpop.xlane.xlu1 %39  ;;  %v34_v20 = vpop.xlane.xlu0 %33 }
  0x8d   :  { %v46_v21 = vadd.f32 %v40_v19, %v29_v17  ;;  %v44_v22 = vadd.f32 %v34_v20, %v27_v18 }
  0x8f   :  { %51 = vst.msk [vmem:[%s215_s1 + $0x10] sm:$0xff] %vm14_vm1, %v46_v21  ;;  %49 = vst.msk [vmem:[%s215_s1] sm:$0xff] %vm14_vm1, %v44_v22 }
  0x90   :  { %v43_v25 = vpop.xlane.xlu1 %42  ;;  %v37_v26 = vpop.xlane.xlu0 %36 }
  0x91   :  { %v47_v27 = vadd.f32 %v43_v25, %v30_v23  ;;  %v45_v28 = vadd.f32 %v37_v26, %v28_v24 }
  0x93   :  { %52 = vst.msk [vmem:[%s215_s1 + $0x18] sm:$0xff] %vm14_vm1, %v47_v27  ;;  %50 = vst.msk [vmem:[%s215_s1 + $0x8] sm:$0xff] %vm14_vm1, %v45_v28 }
  0x94   :  { %v66_v31 = vpop.xlane.xlu1 %65  ;;  %v63_v32 = vpop.xlane.xlu0 %62 }
  0x95   :  { %v74_v33 = vadd.f32 %v66_v31, %v54_v29  ;;  %v73_v34 = vadd.f32 %v63_v32, %v53_v30 }
  0x97   :  { %78 = vst.msk [vmem:[%s216_s2 + $0x8] sm:$0xff] %vm14_vm1, %v74_v33  ;;  %77 = vst.msk [vmem:[%s216_s2] sm:$0xff] %vm14_vm1, %v73_v34 }
  0x98   :  { %v72_v37 = vpop.xlane.xlu1 %71  ;;  %v69_v38 = vpop.xlane.xlu0 %68 }
  0x99   :  { %v76_v39 = vadd.f32 %v72_v37, %v56_v35  ;;  %v75_v40 = vadd.f32 %v69_v38, %v55_v36 }
  0x9b   :  { %80 = vst.msk [vmem:[%s216_s2 + $0x18] sm:$0xff] %vm14_vm1, %v76_v39  ;;  %79 = vst.msk [vmem:[%s216_s2 + $0x10] sm:$0xff] %vm14_vm1, %v75_v40 }

// kernel: generator_forward.19
= control target key start
LH: loop header
LB: loop body
LE: loop exit
PB: predicated region body
PF: predicated region fallthrough
CT: control target
= control target key end

     0   :  { %v152_v0 = vmov 0   ;;  %vm132_vm0 = vcmask 261120   ;;  %s259_s1 = inlined_call_operand.vmem [shape: f32[32,1], index: 1, kind: input, shape index: {}]   ;;  %s260_s2 = inlined_call_operand.vmem [shape: f32[32,1], index: 2, kind: input, shape index: {}]   ;;  %s261_s3 = inlined_call_operand.vmem [shape: f32[32,1], index: 3, kind: input, shape index: {}]   ;;  %s262_s4 = inlined_call_operand.vmem [shape: f32[32,1], index: 4, kind: input, shape index: {}]   ;;  %s263_s0 = inlined_call_operand.vmem [shape: f32[32,32], index: 0, kind: input, shape index: {}]   ;;  %s264_s5 = inlined_call_operand.vmem [shape: f32[32,32], index: 5, kind: output, shape index: {}]  }
   0x1   :  { %143 = vset.pattern.permute.xlu1 %v152_v0  ;;  %142 = vset.pattern.permute.xlu0 %v152_v0  ;;  %v22_v1 = vld [vmem:[%s259_s1 + $0x10] sm:$0xff]  ;;  %v23_v2 = vld [vmem:[%s259_s1 + $0x18] sm:$0xff]  ;;  %v29_v3 = vld [vmem:[%s260_s2 + $0x8] sm:$0xff] }
   0x2   :  { %v26_v4 = vmul.f32 0.03125, %v22_v1  ;;  %v27_v5 = vmul.f32 0.03125, %v23_v2  ;;  %v30_v6 = vld [vmem:[%s260_s2 + $0x10] sm:$0xff]  ;;  %v31_v7 = vld [vmem:[%s260_s2 + $0x18] sm:$0xff]  ;;  %v33_v8 = vmul.f32 0.03125, %v29_v3  ;;  %v21_v11 = vld [vmem:[%s259_s1 + $0x8] sm:$0xff] }
   0x3   :  { %v34_v9 = vmul.f32 0.03125, %v30_v6  ;;  %v35_v10 = vmul.f32 0.03125, %v31_v7  ;;  %v20_v12 = vld [vmem:[%s259_s1] sm:$0xff]  ;;  %v25_v16 = vmul.f32 0.03125, %v21_v11  ;;  %v50_v33 = vld [vmem:[%s261_s3 + $0x10] sm:$0xff]  ;;  %v51_v36 = vld [vmem:[%s261_s3 + $0x18] sm:$0xff] }
   0x4   :  { %v28_v13 = vld [vmem:[%s260_s2] sm:$0xff]  ;;  %v38_v14 = vmul.f32 %v26_v4, %v26_v4  ;;  %v39_v15 = vmul.f32 %v27_v5, %v27_v5  ;;  %v24_v17 = vmul.f32 0.03125, %v20_v12  ;;  %v49_v39 = vld [vmem:[%s261_s3 + $0x8] sm:$0xff]  ;;  %v67_v51 = vld [vmem:[%s262_s4 + $0x18] sm:$0xff] }
   0x5   :  { %v32_v18 = vmul.f32 0.03125, %v28_v13  ;;  %v37_v21 = vmul.f32 %v25_v16, %v25_v16  ;;  %v48_v35 = vld [vmem:[%s261_s3] sm:$0xff]  ;;  %v65_v46 = vld [vmem:[%s262_s4 + $0x8] sm:$0xff]  ;;  %v66_v54 = vld [vmem:[%s262_s4 + $0x10] sm:$0xff] }
   0x6   :  { %v42_v19 = vsub.f32 %v34_v9, %v38_v14  ;;  %v43_v20 = vsub.f32 %v35_v10, %v39_v15  ;;  %v36_v22 = vmul.f32 %v24_v17, %v24_v17  ;;  %v64_v48 = vld [vmem:[%s262_s4] sm:$0xff]  ;;  %v77_v60 = vld [vmem:[%s263_s0 + $0x8] sm:$0xff]  ;;  %v79_v0 = vld [vmem:[%s263_s0 + $0x18] sm:$0xff] }
   0x7   :  { %v41_v25 = vsub.f32 %v33_v8, %v37_v21  ;;  %v76_v61 = vld [vmem:[%s263_s0] sm:$0xff] }
   0x8   :  { %v46_v23 = vmax.f32 %v42_v19, 0.0  ;;  %v47_v24 = vmax.f32 %v43_v20, 0.0  ;;  %v40_v26 = vsub.f32 %v32_v18, %v36_v22 }
   0x9   :  { %v45_v28 = vmax.f32 %v41_v25, 0.0 }
   0xa   :  { %v54_v27 = vadd.f32 1e-05, %v46_v23  ;;  %v44_v29 = vmax.f32 %v40_v26, 0.0  ;;  %v55_v30 = vadd.f32 1e-05, %v47_v24 }
   0xb   :  { %v53_v32 = vadd.f32 1e-05, %v45_v28 }
   0xc   :  { %144 = vrsqrt.f32 %v54_v27  ;;  %v52_v31 = vadd.f32 1e-05, %v44_v29 }
   0xd   :  { %146 = vrsqrt.f32 %v55_v30 }
   0xe   :  { %148 = vrsqrt.f32 %v52_v31 }
   0xf   :  { %150 = vrsqrt.f32 %v53_v32 }
  0x19   :  { %v145_v34 = vpop.eup %144 }
  0x1a   :  { %v147_v37 = vpop.eup %146  ;;  %v62_v38 = vmul.f32 %v145_v34, %v50_v33 }
  0x1b   :  { %v149_v40 = vpop.eup %148  ;;  %v63_v43 = vmul.f32 %v147_v37, %v51_v36 }
  0x1c   :  { %v151_v41 = vpop.eup %150  ;;  %92 = vperm.xlu1 %143, %v62_v38   ;;  %v60_v42 = vmul.f32 %v149_v40, %v48_v35  ;;  %v70_v52 = vmul.f32 %v62_v38, %v26_v4  ;;  %v78_v4 = vld [vmem:[%s263_s0 + $0x10] sm:$0xff] }
  0x1d   :  { %v61_v44 = vmul.f32 %v151_v41, %v49_v39  ;;  %v71_v49 = vmul.f32 %v63_v43, %v27_v5 }
  0x1e   :  { %82 = vperm.xlu0 %142, %v60_v42   ;;  %v68_v45 = vmul.f32 %v60_v42, %v24_v17  ;;  %v74_v56 = vsub.f32 %v66_v54, %v70_v52 }
  0x1f   :  { %v69_v47 = vmul.f32 %v61_v44, %v25_v16  ;;  %v75_v55 = vsub.f32 %v67_v51, %v71_v49 }
  0x20   :  { %97 = vperm.xlu1 %143, %v63_v43   ;;  %v72_v53 = vsub.f32 %v64_v48, %v68_v45 }
  0x21   :  { %v73_v50 = vsub.f32 %v65_v46, %v69_v47 }
  0x22   :  { %87 = vperm.xlu0 %142, %v61_v44  }
  0x24   :  { %111 = vperm.xlu1 %143, %v73_v50  }
  0x26   :  { %106 = vperm.xlu0 %142, %v72_v53  }
  0x28   :  { %121 = vperm.xlu1 %143, %v75_v55  }
  0x2a   :  { %116 = vperm.xlu0 %142, %v74_v56  }
  0x97   :  { %v93_v57 = vpop.permute.xlu1 %92 }
  0x98   :  { %v102_v10 = vmul.f32 %v93_v57, %v78_v4 }
  0x99   :  { %v83_v58 = vpop.permute.xlu0 %82 }
  0x9a   :  { %v100_v2 = vmul.f32 %v83_v58, %v76_v61 }
  0x9b   :  { %v98_v59 = vpop.permute.xlu1 %97 }
  0x9c   :  { %v103_v6 = vmul.f32 %v98_v59, %v79_v0 }
  0x9d   :  { %v88_v62 = vpop.permute.xlu0 %87 }
  0x9e   :  { %v101_v63 = vmul.f32 %v88_v62, %v77_v60 }
  0x9f   :  { %v112_v1 = vpop.permute.xlu1 %111 }
  0xa0   :  { %v125_v3 = vadd.f32 %v112_v1, %v101_v63 }
  0xa1   :  { %v107_v5 = vpop.permute.xlu0 %106 }
  0xa2   :  { %v129_v7 = vmax.f32 %v125_v3, 0.0  ;;  %v124_v8 = vadd.f32 %v107_v5, %v100_v2 }
  0xa3   :  { %v122_v9 = vpop.permute.xlu1 %121 }
  0xa4   :  { %134 = vst.msk [vmem:[%s264_s5 + $0x8] sm:$0xff] %vm132_vm0, %v129_v7  ;;  %v128_v11 = vmax.f32 %v124_v8, 0.0  ;;  %v127_v12 = vadd.f32 %v122_v9, %v103_v6 }
  0xa5   :  { %v117_v13 = vpop.permute.xlu0 %116 }
  0xa6   :  { %133 = vst.msk [vmem:[%s264_s5] sm:$0xff] %vm132_vm0, %v128_v11  ;;  %v131_v14 = vmax.f32 %v127_v12, 0.0  ;;  %v126_v15 = vadd.f32 %v117_v13, %v102_v10 }
  0xa8   :  { %136 = vst.msk [vmem:[%s264_s5 + $0x18] sm:$0xff] %vm132_vm0, %v131_v14  ;;  %v130_v16 = vmax.f32 %v126_v15, 0.0 }
  0xaa   :  { %135 = vst.msk [vmem:[%s264_s5 + $0x10] sm:$0xff] %vm132_vm0, %v130_v16 }

// kernel: generator_forward.24
= control target key start
LH: loop header
LB: loop body
LE: loop exit
PB: predicated region body
PF: predicated region fallthrough
CT: control target
= control target key end

     0   :  { %vm14_vm0 = vcmask 7168   ;;  %v53_v2 = vmov 0.0   ;;  %s119_s0 = inlined_call_operand.vmem [shape: f32[16,128], index: 0, kind: input, shape index: {}]   ;;  %s120_s1 = inlined_call_operand.vmem [shape: f32[16,1], index: 1, kind: output, shape index: {0}]   ;;  %s121_s2 = inlined_call_operand.vmem [shape: f32[16,1], index: 2, kind: output, shape index: {1}]  }
   0x1   :  { %v19_v0 = vld [vmem:[%s119_s0] sm:$0xff]  ;;  %v20_v1 = vld [vmem:[%s119_s0 + $0x8] sm:$0xff]  ;;  %15 = vst.msk [vmem:[%s120_s1] sm:$0xff] %vm14_vm0, %v53_v2  ;;  %16 = vst.msk [vmem:[%s120_s1 + $0x8] sm:$0xff] %vm14_vm0, %v53_v2 }
   0x2   :  { %23 = vadd.xlane.f32.xlu0 %v19_v0  ;;  %v34_v3 = vmul.f32 %v19_v0, %v19_v0  ;;  %v35_v4 = vmul.f32 %v20_v1, %v20_v1  ;;  %17 = vst.msk [vmem:[%s121_s2] sm:$0xff] %vm14_vm0, %v53_v2  ;;  %18 = vst.msk [vmem:[%s121_s2 + $0x8] sm:$0xff] %vm14_vm0, %v53_v2 }
   0x4   :  { %36 = vadd.xlane.f32.xlu1 %v34_v3 }
   0x6   :  { %25 = vadd.xlane.f32.xlu0 %v20_v1 }
   0x8   :  { %38 = vadd.xlane.f32.xlu1 %v35_v4  ;;  %v21_v5 = vld [vmem:[%s120_s1] sm:$0xff]  ;;  %v22_v10 = vld [vmem:[%s120_s1 + $0x8] sm:$0xff] }
   0x9   :  { %v32_v7 = vld [vmem:[%s121_s2] sm:$0xff]  ;;  %v33_v13 = vld [vmem:[%s121_s2 + $0x8] sm:$0xff] }
  0x8b   :  { %v24_v6 = vpop.xlane.xlu0 %23 }
  0x8c   :  { %v27_v8 = vadd.f32 %v24_v6, %v21_v5 }
  0x8d   :  { %v37_v9 = vpop.xlane.xlu1 %36 }
  0x8e   :  { %30 = vst.msk [vmem:[%s120_s1] sm:$0xff] %vm14_vm0, %v27_v8  ;;  %v40_v11 = vadd.f32 %v37_v9, %v32_v7 }
  0x8f   :  { %v26_v12 = vpop.xlane.xlu0 %25 }
  0x90   :  { %42 = vst.msk [vmem:[%s121_s2] sm:$0xff] %vm14_vm0, %v40_v11  ;;  %v28_v14 = vadd.f32 %v26_v12, %v22_v10 }
  0x91   :  { %v39_v15 = vpop.xlane.xlu1 %38 }
  0x92   :  { %31 = vst.msk [vmem:[%s120_s1 + $0x8] sm:$0xff] %vm14_vm0, %v28_v14  ;;  %v41_v16 = vadd.f32 %v39_v15, %v33_v13 }
  0x94   :  { %43 = vst.msk [vmem:[%s121_s2 + $0x8] sm:$0xff] %vm14_vm0, %v41_v16 }

// kernel: generator_forward.25
= control target key start
LH: loop header
LB: loop body
LE: loop exit
PB: predicated region body
PF: predicated region fallthrough
CT: control target
= control target key end

     0   :  { %v89_v0 = vmov 0   ;;  %s156_s1 = inlined_call_operand.vmem [shape: f32[16,1], index: 1, kind: input, shape index: {}]   ;;  %s157_s2 = inlined_call_operand.vmem [shape: f32[16,1], index: 2, kind: input, shape index: {}]   ;;  %s158_s3 = inlined_call_operand.vmem [shape: f32[16,1], index: 3, kind: input, shape index: {}]   ;;  %s159_s4 = inlined_call_operand.vmem [shape: f32[16,1], index: 4, kind: input, shape index: {}]   ;;  %s160_s0 = inlined_call_operand.vmem [shape: f32[16,128], index: 0, kind: input, shape index: {}]   ;;  %s161_s5 = inlined_call_operand.vmem [shape: f32[16,128], index: 5, kind: output, shape index: {}]  }
   0x1   :  { %83 = vset.pattern.permute.xlu0 %v89_v0  ;;  %v20_v1 = vld [vmem:[%s156_s1] sm:$0xff]  ;;  %v21_v2 = vld [vmem:[%s156_s1 + $0x8] sm:$0xff]  ;;  %84 = vset.pattern.permute.xlu1 %v89_v0 }
   0x2   :  { %v24_v3 = vld [vmem:[%s157_s2] sm:$0xff]  ;;  %v22_v4 = vmul.f32 0.0078125, %v20_v1  ;;  %v25_v5 = vld [vmem:[%s157_s2 + $0x8] sm:$0xff]  ;;  %v23_v7 = vmul.f32 0.0078125, %v21_v2 }
   0x3   :  { %v26_v6 = vmul.f32 0.0078125, %v24_v3  ;;  %v27_v8 = vmul.f32 0.0078125, %v25_v5  ;;  %v34_v17 = vld [vmem:[%s158_s3] sm:$0xff]  ;;  %v35_v18 = vld [vmem:[%s158_s3 + $0x8] sm:$0xff] }
   0x4   :  { %v28_v9 = vmul.f32 %v22_v4, %v22_v4  ;;  %v29_v10 = vmul.f32 %v23_v7, %v23_v7  ;;  %v42_v23 = vld [vmem:[%s159_s4] sm:$0xff]  ;;  %v43_v25 = vld [vmem:[%s159_s4 + $0x8] sm:$0xff] }
   0x5   :  { %v48_v29 = vld [vmem:[%s160_s0] sm:$0xff]  ;;  %v49_v33 = vld [vmem:[%s160_s0 + $0x8] sm:$0xff] }
   0x6   :  { %v30_v11 = vsub.f32 %v26_v6, %v28_v9  ;;  %v31_v12 = vsub.f32 %v27_v8, %v29_v10 }
   0x8   :  { %v32_v13 = vmax.f32 %v30_v11, 0.0  ;;  %v33_v14 = vmax.f32 %v31_v12, 0.0 }
   0xa   :  { %v36_v15 = vadd.f32 1e-05, %v32_v13  ;;  %v37_v16 = vadd.f32 1e-05, %v33_v14 }
   0xc   :  { %85 = vrsqrt.f32 %v36_v15 }
   0xd   :  { %87 = vrsqrt.f32 %v37_v16 }
  0x19   :  { %v86_v19 = vpop.eup %85 }
  0x1a   :  { %v88_v20 = vpop.eup %87  ;;  %v40_v21 = vmul.f32 %v86_v19, %v34_v17 }
  0x1b   :  { %v41_v22 = vmul.f32 %v88_v20, %v35_v18 }
  0x1c   :  { %52 = vperm.xlu0 %83, %v40_v21   ;;  %v44_v24 = vmul.f32 %v40_v21, %v22_v4 }
  0x1d   :  { %v45_v26 = vmul.f32 %v41_v22, %v23_v7 }
  0x1e   :  { %v46_v27 = vsub.f32 %v42_v23, %v44_v24 }
  0x1f   :  { %v47_v28 = vsub.f32 %v43_v25, %v45_v26 }
  0x20   :  { %57 = vperm.xlu0 %83, %v41_v22   ;;  %64 = vperm.xlu1 %84, %v46_v27  }
  0x24   :  { %69 = vperm.xlu1 %84, %v47_v28  }
  0x97   :  { %v53_v30 = vpop.permute.xlu0 %52 }
  0x98   :  { %v60_v31 = vmul.f32 %v53_v30, %v48_v29 }
  0x9b   :  { %v58_v32 = vpop.permute.xlu0 %57  ;;  %v65_v34 = vpop.permute.xlu1 %64 }
  0x9c   :  { %v72_v35 = vadd.f32 %v65_v34, %v60_v31  ;;  %v61_v36 = vmul.f32 %v58_v32, %v49_v33 }
  0x9e   :  { %v74_v37 = vmax.f32 %v72_v35, 0.0 }
  0x9f   :  { %v70_v38 = vpop.permute.xlu1 %69 }
  0xa0   :  { %76 = vst [vmem:[%s161_s5] sm:$0xff] %v74_v37  ;;  %v73_v39 = vadd.f32 %v70_v38, %v61_v36 }
  0xa2   :  { %v75_v40 = vmax.f32 %v73_v39, 0.0 }
  0xa4   :  { %77 = vst [vmem:[%s161_s5 + $0x8] sm:$0xff] %v75_v40 }

// kernel: generator_forward.20
= control target key start
LH: loop header
LB: loop body
LE: loop exit
PB: predicated region body
PF: predicated region fallthrough
CT: control target
= control target key end

     0   :  { %v181_v0 = vmov 0.0   ;;  %vm182_vm0 = vmmov 0   ;;  %vm125_vm1 = vcmask 261120   ;;  %s231_s1 = inlined_call_operand.vmem [shape: bf16[128,32], index: 1, kind: input, shape index: {}]   ;;  %s232_s0 = inlined_call_operand.vmem [shape: bf16[16,128], index: 0, kind: input, shape index: {}]   ;;  %s233_s2 = inlined_call_operand.vmem [shape: f32[16,32], index: 2, kind: output, shape index: {}]  }
   0x1   :  { %150 = vmatprep.subr.bf16.mxu0 %v181_v0  ;;  %v172_v1 = vld [vmem:[%s231_s1 + $0x38] sm:$0xff]   ;;  %166 = vmatprep.mubr.msk.bf16.mxu0 %vm182_vm0, %v181_v0  ;;  %v173_v2 = vld [vmem:[%s231_s1 + $0x30] sm:$0xff]   ;;  %v174_v3 = vld [vmem:[%s231_s1 + $0x28] sm:$0xff]  }
   0x2   :  { %151 = vmatpush3.bf16.msra.mxu0 %v172_v1  ;;  %v175_v4 = vld [vmem:[%s231_s1 + $0x20] sm:$0xff]   ;;  %v176_v5 = vld [vmem:[%s231_s1 + $0x18] sm:$0xff]   ;;  %v177_v6 = vld [vmem:[%s231_s1 + $0x10] sm:$0xff]  }
   0x3   :  { %152 = vmatprep.subr.bf16.mxu0 %v181_v0  ;;  %v178_v7 = vld [vmem:[%s231_s1 + $0x8] sm:$0xff]   ;;  %v179_v8 = vld [vmem:[%s231_s1] sm:$0xff]  }
   0x4   :  { %v180_v9 = vld [vmem:[%s232_s0] sm:$0xff]  }
   0x6   :  { %153 = vmatpush3.bf16.msra.mxu0 %v173_v2 }
   0x7   :  { %154 = vmatprep.subr.bf16.mxu0 %v181_v0 }
   0xa   :  { %155 = vmatpush3.bf16.msra.mxu0 %v174_v3 }
   0xb   :  { %156 = vmatprep.subr.bf16.mxu0 %v181_v0 }
   0xe   :  { %157 = vmatpush3.bf16.msra.mxu0 %v175_v4 }
   0xf   :  { %158 = vmatprep.subr.bf16.mxu0 %v181_v0 }
  0x12   :  { %159 = vmatpush3.bf16.msra.mxu0 %v176_v5 }
  0x13   :  { %160 = vmatprep.subr.bf16.mxu0 %v181_v0 }
  0x16   :  { %161 = vmatpush3.bf16.msra.mxu0 %v177_v6 }
  0x17   :  { %162 = vmatprep.subr.bf16.mxu0 %v181_v0 }
  0x1a   :  { %163 = vmatpush3.bf16.msra.mxu0 %v178_v7 }
  0x1b   :  { %164 = vmatprep.subr.bf16.mxu0 %v181_v0 }
  0x1e   :  { %165 = vmatpush3.bf16.msra.mxu0 %v179_v8 }
  0x21   :  { %167 = vmatmul.mubr.bf16.vlgmr.msra.gmra.mxu0 %v180_v9 }
  0xe1   :  { %v118_v10 = vpop.f32.mrf.mxu0 }
  0xe2   :  { %126 = vst.msk [vmem:[%s233_s2] sm:$0xff] %vm125_vm1, %v118_v10 }
  0xe3   :  { %v168_v11 = vpop.f32.mrf.mxu0 }
  0xe5   :  { %v121_v12 = vpop.f32.mrf.mxu0 }
  0xe6   :  { %127 = vst.msk [vmem:[%s233_s2 + $0x8] sm:$0xff] %vm125_vm1, %v121_v12 }
  0xe7   :  { %v169_v13 = vpop.f32.mrf.mxu0 }

// kernel: generator_forward.26
= control target key start
LH: loop header
LB: loop body
LE: loop exit
PB: predicated region body
PF: predicated region fallthrough
CT: control target
= control target key end

     0   :  { %v122_v0 = vmov 0.0   ;;  %vm123_vm0 = vmmov 0   ;;  %vm45_vm1 = vcmask 523264   ;;  %s157_s1 = inlined_call_operand.vmem [shape: bf16[64,128], index: 1, kind: input, shape index: {}]   ;;  %s158_s0 = inlined_call_operand.vmem [shape: bf16[8,64], index: 0, kind: input, shape index: {}]   ;;  %s159_s2 = inlined_call_operand.vmem [shape: f32[8,128], index: 2, kind: output, shape index: {}]  }
   0x1   :  { %104 = vmatprep.subr.bf16.mxu0 %v122_v0  ;;  %v118_v1 = vld [vmem:[%s157_s1 + $0x18] sm:$0xff]   ;;  %112 = vmatprep.mubr.msk.bf16.mxu0 %vm123_vm0, %v122_v0  ;;  %v119_v2 = vld [vmem:[%s157_s1 + $0x10] sm:$0xff]   ;;  %v120_v3 = vld [vmem:[%s157_s1 + $0x8] sm:$0xff]  }
   0x2   :  { %105 = vmatpush3.bf16.msra.mxu0 %v118_v1  ;;  %v121_v4 = vld [vmem:[%s157_s1] sm:$0xff]  }
   0x3   :  { %106 = vmatprep.subr.bf16.mxu0 %v122_v0  ;;  %v12_v5 = vld [vmem:[%s158_s0] sm:$0xf] }
   0x6   :  { %107 = vmatpush3.bf16.msra.mxu0 %v119_v2 }
   0x7   :  { %108 = vmatprep.subr.bf16.mxu0 %v122_v0 }
   0xa   :  { %109 = vmatpush3.bf16.msra.mxu0 %v120_v3 }
   0xb   :  { %110 = vmatprep.subr.bf16.mxu0 %v122_v0 }
   0xe   :  { %111 = vmatpush3.bf16.msra.mxu0 %v121_v4 }
  0x11   :  { %113 = vmatmul.mubr.msk.bf16.vlgmr.msra.gmra.mxu0 %vm45_vm1, %v12_v5 }
  0xd1   :  { %v83_v6 = vpop.f32.mrf.mxu0 }
  0xd2   :  { %89 = vst [vmem:[%s159_s2] sm:$0xff] %v83_v6 }
  0xd3   :  { %v114_v7 = vpop.f32.mrf.mxu0 }
  0xd5   :  { %v86_v8 = vpop.f32.mrf.mxu0 }
  0xd7   :  { %v115_v9 = vpop.f32.mrf.mxu0 }

// kernel: generator_forward.30
= control target key start
LH: loop header
LB: loop body
LE: loop exit
PB: predicated region body
PF: predicated region fallthrough
CT: control target
= control target key end

     0   :  { %vm14_vm0 = vcmask 7168   ;;  %v51_v3 = vmov 0.0   ;;  %s101_s0 = inlined_call_operand.vmem [shape: f32[8,512], index: 0, kind: input, shape index: {}]   ;;  %s102_s1 = inlined_call_operand.vmem [shape: f32[8,1], index: 1, kind: output, shape index: {0}]   ;;  %s103_s2 = inlined_call_operand.vmem [shape: f32[8,1], index: 2, kind: output, shape index: {1}]  }
   0x1   :  { %v17_v0 = vld [vmem:[%s101_s0] sm:$0xff]  ;;  %v18_v1 = vld [vmem:[%s101_s0 + $0x8] sm:$0xff]  ;;  %v19_v2 = vld [vmem:[%s101_s0 + $0x10] sm:$0xff]  ;;  %15 = vst.msk [vmem:[%s102_s1] sm:$0xff] %vm14_vm0, %v51_v3 }
   0x2   :  { %v22_v4 = vadd.f32 %v18_v1, %v17_v0  ;;  %v31_v5 = vmul.f32 %v17_v0, %v17_v0  ;;  %v32_v6 = vmul.f32 %v18_v1, %v18_v1  ;;  %v33_v7 = vmul.f32 %v19_v2, %v19_v2  ;;  %v20_v8 = vld [vmem:[%s101_s0 + $0x18] sm:$0xff]  ;;  %16 = vst.msk [vmem:[%s103_s2] sm:$0xff] %vm14_vm0, %v51_v3 }
   0x3   :  { %v34_v10 = vmul.f32 %v20_v8, %v20_v8 }
   0x4   :  { %v23_v9 = vadd.f32 %v22_v4, %v19_v2  ;;  %v35_v11 = vadd.f32 %v32_v6, %v31_v5 }
   0x6   :  { %v24_v12 = vadd.f32 %v23_v9, %v20_v8  ;;  %v36_v13 = vadd.f32 %v35_v11, %v33_v7 }
   0x8   :  { %25 = vadd.xlane.f32.xlu0 %v24_v12  ;;  %v37_v14 = vadd.f32 %v36_v13, %v34_v10  ;;  %v21_v15 = vld [vmem:[%s102_s1] sm:$0xff] }
   0x9   :  { %v30_v18 = vld [vmem:[%s103_s2] sm:$0xff] }
   0xc   :  { %38 = vadd.xlane.f32.xlu0 %v37_v14 }
  0x91   :  { %v26_v16 = vpop.xlane.xlu0 %25 }
  0x92   :  { %v27_v17 = vadd.f32 %v26_v16, %v21_v15 }
  0x94   :  { %29 = vst.msk [vmem:[%s102_s1] sm:$0xff] %vm14_vm0, %v27_v17 }
  0x95   :  { %v39_v19 = vpop.xlane.xlu0 %38 }
  0x96   :  { %v40_v20 = vadd.f32 %v39_v19, %v30_v18 }
  0x98   :  { %41 = vst.msk [vmem:[%s103_s2] sm:$0xff] %vm14_vm0, %v40_v20 }

// kernel: generator_forward.31
= control target key start
LH: loop header
LB: loop body
LE: loop exit
PB: predicated region body
PF: predicated region fallthrough
CT: control target
= control target key end

     0   :  { %v72_v0 = vmov 0   ;;  %s139_s1 = inlined_call_operand.vmem [shape: f32[8,1], index: 1, kind: input, shape index: {}]   ;;  %s140_s2 = inlined_call_operand.vmem [shape: f32[8,1], index: 2, kind: input, shape index: {}]   ;;  %s141_s3 = inlined_call_operand.vmem [shape: f32[8,1], index: 3, kind: input, shape index: {}]   ;;  %s142_s4 = inlined_call_operand.vmem [shape: f32[8,1], index: 4, kind: input, shape index: {}]   ;;  %s143_s0 = inlined_call_operand.vmem [shape: f32[8,512], index: 0, kind: input, shape index: {}]   ;;  %s144_s5 = inlined_call_operand.vmem [shape: f32[8,512], index: 5, kind: output, shape index: {}]  }
   0x1   :  { %69 = vset.pattern.permute.xlu0 %v72_v0  ;;  %v20_v1 = vld [vmem:[%s139_s1] sm:$0xff]  ;;  %v35_v17 = vld [vmem:[%s143_s0 + $0x8] sm:$0xff]  ;;  %v36_v18 = vld [vmem:[%s143_s0 + $0x10] sm:$0xff] }
   0x2   :  { %v22_v2 = vld [vmem:[%s140_s2] sm:$0xff]  ;;  %v21_v3 = vmul.f32 0.001953125, %v20_v1  ;;  %v37_v19 = vld [vmem:[%s143_s0 + $0x18] sm:$0xff] }
   0x3   :  { %v23_v4 = vmul.f32 0.001953125, %v22_v2  ;;  %v27_v9 = vld [vmem:[%s141_s3] sm:$0xff] }
   0x4   :  { %v24_v5 = vmul.f32 %v21_v3, %v21_v3  ;;  %v31_v12 = vld [vmem:[%s142_s4] sm:$0xff] }
   0x5   :  { %v34_v15 = vld [vmem:[%s143_s0] sm:$0xff] }
   0x6   :  { %v25_v6 = vsub.f32 %v23_v4, %v24_v5 }
   0x8   :  { %v26_v7 = vmax.f32 %v25_v6, 0.0 }
   0xa   :  { %v28_v8 = vadd.f32 1e-05, %v26_v7 }
   0xc   :  { %70 = vrsqrt.f32 %v28_v8 }
  0x19   :  { %v71_v10 = vpop.eup %70 }
  0x1a   :  { %v30_v11 = vmul.f32 %v71_v10, %v27_v9 }
  0x1c   :  { %40 = vperm.xlu0 %69, %v30_v11   ;;  %v32_v13 = vmul.f32 %v30_v11, %v21_v3 }
  0x1e   :  { %v33_v14 = vsub.f32 %v31_v12, %v32_v13 }
  0x20   :  { %49 = vperm.xlu0 %69, %v33_v14  }
  0x97   :  { %v41_v16 = vpop.permute.xlu0 %40 }
  0x98   :  { %v43_v20 = vmul.f32 %v41_v16, %v34_v15  ;;  %v44_v21 = vmul.f32 %v41_v16, %v35_v17  ;;  %v45_v22 = vmul.f32 %v41_v16, %v36_v18  ;;  %v46_v23 = vmul.f32 %v41_v16, %v37_v19 }
  0x9b   :  { %v50_v24 = vpop.permute.xlu0 %49 }
  0x9c   :  { %v52_v25 = vadd.f32 %v50_v24, %v43_v20  ;;  %v53_v26 = vadd.f32 %v50_v24, %v44_v21  ;;  %v54_v27 = vadd.f32 %v50_v24, %v45_v22  ;;  %v55_v28 = vadd.f32 %v50_v24, %v46_v23 }
  0x9e   :  { %v56_v29 = vmax.f32 %v52_v25, 0.0  ;;  %v57_v30 = vmax.f32 %v53_v26, 0.0  ;;  %v58_v31 = vmax.f32 %v54_v27, 0.0  ;;  %v59_v32 = vmax.f32 %v55_v28, 0.0 }
  0xa0   :  { %60 = vst [vmem:[%s144_s5] sm:$0xff] %v56_v29  ;;  %61 = vst [vmem:[%s144_s5 + $0x8] sm:$0xff] %v57_v30 }
  0xa1   :  { %62 = vst [vmem:[%s144_s5 + $0x10] sm:$0xff] %v58_v31  ;;  %63 = vst [vmem:[%s144_s5 + $0x18] sm:$0xff] %v59_v32 }

// kernel: generator_forward.32
= control target key start
LH: loop header
LB: loop body
LE: loop exit
PB: predicated region body
PF: predicated region fallthrough
CT: control target
= control target key end

     0   :  { %v196_v1 = vmov 0   ;;  %vm61_vm0 = vcmask 261120   ;;  %s245_s1 = inlined_call_operand.vmem [shape: bf16[32,512], index: 1, kind: input, shape index: {}]   ;;  %s246_s0 = inlined_call_operand.vmem [shape: bf16[3,32], index: 0, kind: input, shape index: {}]   ;;  %s247_s2 = inlined_call_operand.vmem [shape: f32[3,512], index: 2, kind: output, shape index: {}]  }
   0x1   :  { %v176_v0 = vld [vmem:[%s245_s1 + $0x24] ss:$16 sps:$4 sm:$0xff]   ;;  %97 = vmatprep.mubr.bf16.mxu0 %v196_v1  ;;  %138 = vmatprep.mubr.bf16.mxu1 %v196_v1  ;;  %v178_v2 = vld [vmem:[%s245_s1 + $0x2c] ss:$16 sps:$4 sm:$0xff]   ;;  %v180_v3 = vld [vmem:[%s245_s1 + $0x20] ss:$16 sps:$4 sm:$0xff]  }
   0x2   :  { %77 = vmatprep.subr.bf16.mxu0 %v176_v0  ;;  %v181_v4 = vld [vmem:[%s245_s1 + $0x28] ss:$16 sps:$4 sm:$0xff]   ;;  %118 = vmatprep.subr.bf16.mxu1 %v178_v2  ;;  %v182_v5 = vld [vmem:[%s245_s1 + $0x4] ss:$16 sps:$4 sm:$0xff]   ;;  %v184_v6 = vld [vmem:[%s245_s1 + $0xc] ss:$16 sps:$4 sm:$0xff]  }
   0x3   :  { %78 = vmatpush1.bf16.msra.mxu0 %v180_v3  ;;  %119 = vmatpush1.bf16.msra.mxu1 %v181_v4  ;;  %v186_v7 = vld [vmem:[%s245_s1] ss:$16 sps:$4 sm:$0xff]   ;;  %v187_v8 = vld [vmem:[%s245_s1 + $0x8] ss:$16 sps:$4 sm:$0xff]  }
   0x4   :  { %79 = vmatprep.subr.bf16.mxu0 %v182_v5  ;;  %120 = vmatprep.subr.bf16.mxu1 %v184_v6  ;;  %v12_v9 = vld [vmem:[%s246_s0] sm:$0x3] }
   0x7   :  { %80 = vmatpush1.bf16.msra.mxu0 %v186_v7  ;;  %121 = vmatpush1.bf16.msra.mxu1 %v187_v8 }
   0xa   :  { %173 = vmatmul.mubr.msk.bf16.vlgmr.msra.gmra.mxu0 %vm61_vm0, %v12_v9  ;;  %174 = vmatmul.mubr.msk.bf16.vlgmr.msra.gmra.mxu1 %vm61_vm0, %v12_v9 }
  0xca   :  { %v99_v10 = vpop.f32.mrf.mxu0  ;;  %v140_v11 = vpop.f32.mrf.mxu1 }
  0xcb   :  { %188 = vtanh.f32 %v99_v10 }
  0xcc   :  { %190 = vtanh.f32 %v140_v11  ;;  %v101_v12 = vpop.f32.mrf.mxu0  ;;  %v142_v13 = vpop.f32.mrf.mxu1 }
  0xcd   :  { %192 = vtanh.f32 %v101_v12 }
  0xce   :  { %194 = vtanh.f32 %v142_v13  ;;  %v103_v14 = vpop.f32.mrf.mxu0  ;;  %v144_v15 = vpop.f32.mrf.mxu1 }
  0xd0   :  { %v104_v16 = vpop.f32.mrf.mxu0  ;;  %v145_v17 = vpop.f32.mrf.mxu1 }
  0xd8   :  { %v189_v18 = vpop.eup %188 }
  0xd9   :  { %v191_v19 = vpop.eup %190 }
  0xda   :  { %v193_v20 = vpop.eup %192 }
  0xdb   :  { %v195_v21 = vpop.eup %194  ;;  %v155_v22 = vcombine.low %v189_v18, %v193_v20 }
  0xdc   :  { %v156_v23 = vcombine.low %v191_v19, %v195_v21 }
  0xdd   :  { %159 = vst [vmem:[%s247_s2] sm:$0x77] %v155_v22 }
  0xde   :  { %160 = vst [vmem:[%s247_s2 + $0x8] sm:$0x77] %v156_v23 }

</bundles_post_ra>
